<compile_context>
chip_gen: v7x
topology: tpu7x:2x2x1
jax: 0.10.0
libtpu: 0.0.40
codegen_flags: <defaults>
</compile_context>

<pallas_src>
import functools
import math

import jax
import jax.numpy as jnp
import numpy as np
from jax.experimental import pallas as pl
from jax.experimental.pallas import tpu as pltpu

_LOG_EPS = math.log(1e-8)   # matches torch's .add_(1e-8).log()


def _mom_kernel(x_ref, rhs_sq_ref, rhs_lin_ref, mu_eff_ref, const_ref, logw_ref,
                y_ref, z_ref, *, n_component, tile_out, leaky):
    K, to = n_component, tile_out

    x = x_ref[...].astype(jnp.float32)                       # (tb, N)
    # inplace LeakyReLU in torch => both y and z branches see the activated x
    xa = jnp.where(x >= 0, x, leaky * x)

    # ---- y branch: one MXU dot (pi folded into mu_eff in the wrapper); write it
    #      back immediately so its vregs die before the exp/log chain starts.
    y = jnp.dot(xa.astype(mu_eff_ref.dtype), mu_eff_ref[...],
                preferred_element_type=jnp.float32)          # (tb, to)
    y_ref[...] = y.astype(y_ref.dtype)

    # ---- z branch: two accumulated f32 dots (no LHS lane concat, no zero RHS block).
    #      -0.5 and log(softmax(pi)) are pre-folded, so logp = const + quad directly.
    quad = jnp.dot(xa * xa, rhs_sq_ref[...],
                   preferred_element_type=jnp.float32)       # (tb, K*to)
    quad = quad + jnp.dot(xa, rhs_lin_ref[...],
                          preferred_element_type=jnp.float32)
    logp = const_ref[...] + quad                             # (tb, K*to)

    # stable log-sum-exp over the K components (lane-aligned `to`-wide slices,
    # no (tb, K, to) relayout; K is small and statically unrolled)
    m = logp[:, 0:to]
    for k in range(1, K):
        m = jnp.maximum(m, logp[:, k * to:(k + 1) * to])
    s = jnp.exp(logp[:, 0:to] - m)
    for k in range(1, K):
        s = s + jnp.exp(logp[:, k * to:(k + 1) * to] - m)
    lse = m + jnp.log(s)            # = log(sum_k softmax(pi)_k * exp(logp_k))

    # z = log(omega+eps) + log(exp(lse) + eps), via logaddexp: one exp, one log.
    mz = jnp.maximum(lse, _LOG_EPS)
    z_term = mz + jnp.log(1.0 + jnp.exp(-jnp.abs(lse - _LOG_EPS)))
    z_ref[...] = (logw_ref[...] + z_term).astype(z_ref.dtype)


def mom_layer_forward(x, mu, log_sigma, pi, omega, *, leaky=0.2, tb=128, to=128,
                      use_bf16_matmul=False):
    """x: (B, N); mu: (N, K, O); log_sigma: (N, K, O); pi: (K, O); omega: (1, O).

    tb: batch tile (128 for v5e / small B; 256 on v6e/v7x at production B, keeping
        >= 2 grid steps per TensorCore on v7x).
    to: output tile (multiple of 128, or equal to O)."""
    B, N = x.shape
    Nm, K, O = mu.shape
    assert Nm == N
    tb = min(tb, B)
    assert B % tb == 0 and (tb == B or tb % 8 == 0)
    to = min(to, O)
    assert O % to == 0 and (to == O or to % 128 == 0)
    nO = O // to

    f32 = jnp.float32
    x = x.astype(f32)
    mu = mu.astype(f32)
    log_sigma = log_sigma.astype(f32)
    pi = pi.astype(f32)
    omega = omega.astype(f32)

    # ---- batch-invariant precompute (all hoisted out of the kernel) ----
    inv_sig = jnp.exp(-log_sigma)                       # (N, K, O)
    rhs_sq = -0.5 * inv_sig                             # multiplies xa^2  (-0.5 folded)
    rhs_lin = mu * inv_sig                              # multiplies xa    (-0.5 * -2mu = +mu)

    # O-tile-major column reordering: for O-tile j the kernel's (N, K*to) RHS block
    # (and its matching const columns) are contiguous, with components kept together
    # so the log-sum-exp over K stays local to the tile.
    def _otile_rhs(r):      # (N, K, O) -> (N, nO*K*to)
        return r.reshape(N, K, nO, to).transpose(0, 2, 1, 3).reshape(N, nO * K * to)

    rhs_sq = _otile_rhs(rhs_sq)
    rhs_lin = _otile_rhs(rhs_lin)

    mu_eff = jnp.einsum("nko,ko->no", mu, pi)           # (N, O): pi folded into y weights
    if use_bf16_matmul:
        # only the y columns go bf16; quad columns stay f32 (they feed a
        # large-magnitude cancellation against `const`).
        mu_eff = mu_eff.astype(jnp.bfloat16)

    # const[k,o] = -0.5*(sum_n log_sigma + sum_n mu^2*inv_sig) + log(softmax(pi))
    const = (-0.5 * (jnp.sum(log_sigma, axis=0) + jnp.sum(mu * mu * inv_sig, axis=0))
             + jax.nn.log_softmax(pi, axis=0))          # (K, O)
    const = const.reshape(K, nO, to).transpose(1, 0, 2).reshape(1, nO * K * to)

    log_omega = jnp.log(omega + 1e-8).reshape(1, O)     # (1, O)

    kernel = functools.partial(_mom_kernel, n_component=K, tile_out=to, leaky=leaky)
    grid = (B // tb, nO)

    # Tight VMEM budget from actual (double-buffered) tile bytes, 4x safety margin,
    # floored at 16 MiB and capped at 32 MiB (leaves headroom on v7x's 64 MiB).
    mu_eff_item = 2 if use_bf16_matmul else 4
    tile_bytes = (
        2 * tb * N * 4                      # x tile
        + 2 * 2 * N * K * to * 4            # rhs_sq + rhs_lin blocks
        + 2 * N * to * mu_eff_item          # mu_eff block
        + 2 * K * to * 4 + 2 * to * 4       # const + log_omega blocks
        + 2 * 2 * tb * to * 4               # y + z output blocks
    )
    vmem_limit = int(min(32 * 1024 * 1024, max(16 * 1024 * 1024, 4 * tile_bytes)))

    y, z = pl.pallas_call(
        kernel,
        out_shape=(jax.ShapeDtypeStruct((B, O), f32),
                   jax.ShapeDtypeStruct((B, O), f32)),
        grid_spec=pltpu.PrefetchScalarGridSpec(
            num_scalar_prefetch=0,
            grid=grid,
            in_specs=[
                pl.BlockSpec((tb, N), lambda i, j: (i, 0)),        # x batch tile
                pl.BlockSpec((N, K * to), lambda i, j: (0, j)),    # -0.5*inv_sig  (O-tile)
                pl.BlockSpec((N, K * to), lambda i, j: (0, j)),    # mu*inv_sig    (O-tile)
                pl.BlockSpec((N, to), lambda i, j: (0, j)),        # mu_eff        (O-tile)
                pl.BlockSpec((1, K * to), lambda i, j: (0, j)),    # logp const + log softmax(pi)
                pl.BlockSpec((1, to), lambda i, j: (0, j)),        # log(omega + eps)
            ],
            out_specs=[
                pl.BlockSpec((tb, to), lambda i, j: (i, j)),       # y
                pl.BlockSpec((tb, to), lambda i, j: (i, j)),       # z
            ],
        ),
        compiler_params=pltpu.CompilerParams(
            dimension_semantics=("parallel", "parallel"),
            vmem_limit_bytes=vmem_limit),
    )(x, rhs_sq, rhs_lin, mu_eff, const, log_omega)

    return y, z


def mom_layer_reference(x, mu, log_sigma, pi, omega, *, leaky=0.2):
    """Pure-JAX reference mirroring the PyTorch forward (inplace LeakyReLU)."""
    xa = jnp.where(x >= 0, x, leaky * x)                            # (B, N)
    N, K, O = mu.shape
    ym = (xa @ mu.reshape(N, K * O)).reshape(-1, K, O)              # (B, K, O)
    y = jnp.sum(ym * pi[None, :, :], axis=1)                        # (B, O)

    diff = xa[:, :, None, None] - mu[None, :, :, :]                 # (B, N, K, O)
    logp = -0.5 * (jnp.sum(log_sigma, axis=0)[None]
                   + jnp.sum(diff * diff / jnp.exp(log_sigma)[None], axis=1))  # (B, K, O)
    sm = jax.nn.softmax(pi, axis=0)                                 # (K, O)
    zsum = jnp.sum(sm[None] * jnp.exp(logp), axis=1)                # (B, O)
    z = jnp.log(omega + 1e-8) + jnp.log(zsum + 1e-8)
    return y, z


if __name__ == "__main__":
    # Small shapes consistent with the module's forward.  O=256 exercises the
    # O-tiling grid axis (to=128 -> 2 tiles); B=256 with tb=128 gives a 2-step
    # "parallel" batch axis (splittable across v7x's two TensorCores).
    B, N, K, O = 256, 32, 2, 256     # batch, num (in), n_component, num_out
    leaky = 0.2

    key = jax.random.PRNGKey(0)
    kx, kmu = jax.random.split(key)

    x = jax.random.normal(kx, (B, N), dtype=jnp.float32)

    # deterministic parameter init (kaiming_uniform-style bound 1/sqrt(fan_in=K*O))
    bound = 1.0 / math.sqrt(K * O)
    mu = jax.random.uniform(kmu, (N, K, O), minval=-bound, maxval=bound,
                            dtype=jnp.float32)
    log_sigma = jnp.zeros((N, K, O), dtype=jnp.float32)             # torch: zeros
    pi = jnp.ones((K, O), dtype=jnp.float32)                        # torch: ones
    omega = jnp.zeros((1, O), dtype=jnp.float32)                    # torch: zeros

    y, z = mom_layer_forward(x, mu, log_sigma, pi, omega,
                             leaky=leaky, tb=128, to=128)
    jax.block_until_ready((y, z))

    y_ref, z_ref = mom_layer_reference(x, mu, log_sigma, pi, omega, leaky=leaky)
    np.testing.assert_allclose(np.asarray(y), np.asarray(y_ref), rtol=1e-4, atol=1e-4)
    np.testing.assert_allclose(np.asarray(z), np.asarray(z_ref), rtol=1e-4, atol=1e-4)

    print("KERNEL_OK")
</pallas_src>

<mosaic_0001>
module attributes {stable_mosaic.version = 11 : i64} {
  func.func @_mom_kernel(%arg0: i32, %arg1: i32, %arg2: memref<128x32xf32, #tpu.memory_space<vmem>>, %arg3: memref<32x256xf32, #tpu.memory_space<vmem>>, %arg4: memref<32x256xf32, #tpu.memory_space<vmem>>, %arg5: memref<32x128xf32, #tpu.memory_space<vmem>>, %arg6: memref<1x256xf32, #tpu.memory_space<vmem>>, %arg7: memref<1x128xf32, #tpu.memory_space<vmem>>, %arg8: memref<128x128xf32, #tpu.memory_space<vmem>>, %arg9: memref<128x128xf32, #tpu.memory_space<vmem>>) attributes {dimension_semantics = [#tpu.dimension_semantics<parallel>, #tpu.dimension_semantics<parallel>], iteration_bounds = array<i64: 2, 2>, scalar_prefetch = 0 : i64, scratch_operands = 0 : i64, tpu.core_type = #tpu.core_type<tc>, window_params = [{transform_indices = @transform_0, window_bounds = array<i64: 128, 32>}, {transform_indices = @transform_1, window_bounds = array<i64: 32, 256>}, {transform_indices = @transform_2, window_bounds = array<i64: 32, 256>}, {transform_indices = @transform_3, window_bounds = array<i64: 32, 128>}, {transform_indices = @transform_4, window_bounds = array<i64: 1, 256>}, {transform_indices = @transform_5, window_bounds = array<i64: 1, 128>}, {transform_indices = @transform_6, window_bounds = array<i64: 128, 128>}, {transform_indices = @transform_7, window_bounds = array<i64: 128, 128>}]} {
    %c0 = arith.constant 0 : index
    %c0_0 = arith.constant 0 : index
    %0 = vector.load %arg2[%c0, %c0_0] : memref<128x32xf32, #tpu.memory_space<vmem>>, vector<128x32xf32>
    %cst = arith.constant 0.000000e+00 : f32
    %1 = vector.broadcast %cst : f32 to vector<128x32xf32>
    %2 = arith.cmpf oge, %0, %1 : vector<128x32xf32>
    %cst_1 = arith.constant 2.000000e-01 : f32
    %3 = vector.broadcast %cst_1 : f32 to vector<128x32xf32>
    %4 = arith.mulf %3, %0 : vector<128x32xf32>
    %5 = arith.select %2, %0, %4 : vector<128x32xi1>, vector<128x32xf32>
    %c0_2 = arith.constant 0 : index
    %c0_3 = arith.constant 0 : index
    %6 = vector.load %arg5[%c0_2, %c0_3] : memref<32x128xf32, #tpu.memory_space<vmem>>, vector<32x128xf32>
    %cst_4 = arith.constant dense<0.000000e+00> : vector<128x128xf32>
    %7 = tpu.matmul %5, %6, %cst_4 {dimension_numbers = #tpu.dot_dimension_numbers<[1], [0], [0], [1], [0, 0, 1, 1], [], []>} : vector<128x32xf32>, vector<32x128xf32>, vector<128x128xf32> -> vector<128x128xf32>
    %c0_5 = arith.constant 0 : index
    %c0_6 = arith.constant 0 : index
    %8 = vector.load %arg8[%c0_5, %c0_6] : memref<128x128xf32, #tpu.memory_space<vmem>>, vector<128x128xf32>
    tpu.vector_store %arg8[%c0_5, %c0_6], %7 {strides = array<i32>} : memref<128x128xf32, #tpu.memory_space<vmem>>, vector<128x128xf32>,
    %9 = arith.mulf %5, %5 : vector<128x32xf32>
    %c0_7 = arith.constant 0 : index
    %c0_8 = arith.constant 0 : index
    %10 = vector.load %arg3[%c0_7, %c0_8] : memref<32x256xf32, #tpu.memory_space<vmem>>, vector<32x256xf32>
    %cst_9 = arith.constant dense<0.000000e+00> : vector<128x256xf32>
    %11 = tpu.matmul %9, %10, %cst_9 {dimension_numbers = #tpu.dot_dimension_numbers<[1], [0], [0], [1], [0, 0, 1, 1], [], []>} : vector<128x32xf32>, vector<32x256xf32>, vector<128x256xf32> -> vector<128x256xf32>
    %c0_10 = arith.constant 0 : index
    %c0_11 = arith.constant 0 : index
    %12 = vector.load %arg4[%c0_10, %c0_11] : memref<32x256xf32, #tpu.memory_space<vmem>>, vector<32x256xf32>
    %cst_12 = arith.constant dense<0.000000e+00> : vector<128x256xf32>
    %13 = tpu.matmul %5, %12, %cst_12 {dimension_numbers = #tpu.dot_dimension_numbers<[1], [0], [0], [1], [0, 0, 1, 1], [], []>} : vector<128x32xf32>, vector<32x256xf32>, vector<128x256xf32> -> vector<128x256xf32>
    %14 = arith.addf %11, %13 : vector<128x256xf32>
    %c0_13 = arith.constant 0 : index
    %c0_14 = arith.constant 0 : index
    %15 = vector.load %arg6[%c0_13, %c0_14] : memref<1x256xf32, #tpu.memory_space<vmem>>, vector<1x256xf32>
    %16 = vector.broadcast %15 : vector<1x256xf32> to vector<128x256xf32>
    %17 = arith.addf %16, %14 : vector<128x256xf32>
    %18 = vector.extract_strided_slice %17 {offsets = [0, 0], sizes = [128, 128], strides = [1, 1]} : vector<128x256xf32> to vector<128x128xf32>
    %19 = vector.extract_strided_slice %17 {offsets = [0, 128], sizes = [128, 128], strides = [1, 1]} : vector<128x256xf32> to vector<128x128xf32>
    %20 = arith.maximumf %18, %19 : vector<128x128xf32>
    %21 = vector.extract_strided_slice %17 {offsets = [0, 0], sizes = [128, 128], strides = [1, 1]} : vector<128x256xf32> to vector<128x128xf32>
    %22 = arith.subf %21, %20 : vector<128x128xf32>
    %23 = math.exp %22 : vector<128x128xf32>
    %24 = vector.extract_strided_slice %17 {offsets = [0, 128], sizes = [128, 128], strides = [1, 1]} : vector<128x256xf32> to vector<128x128xf32>
    %25 = arith.subf %24, %20 : vector<128x128xf32>
    %26 = math.exp %25 : vector<128x128xf32>
    %27 = arith.addf %23, %26 : vector<128x128xf32>
    %28 = math.log %27 : vector<128x128xf32>
    %29 = arith.addf %20, %28 : vector<128x128xf32>
    %cst_15 = arith.constant -18.420681 : f32
    %30 = vector.broadcast %cst_15 : f32 to vector<128x128xf32>
    %31 = arith.maximumf %29, %30 : vector<128x128xf32>
    %cst_16 = arith.constant -18.420681 : f32
    %32 = vector.broadcast %cst_16 : f32 to vector<128x128xf32>
    %33 = arith.subf %29, %32 : vector<128x128xf32>
    %34 = math.absf %33 : vector<128x128xf32>
    %cst_17 = arith.constant 0.000000e+00 : f32
    %35 = vector.broadcast %cst_17 : f32 to vector<128x128xf32>
    %36 = arith.subf %35, %34 : vector<128x128xf32>
    %37 = math.exp %36 : vector<128x128xf32>
    %cst_18 = arith.constant 1.000000e+00 : f32
    %38 = vector.broadcast %cst_18 : f32 to vector<128x128xf32>
    %39 = arith.addf %38, %37 : vector<128x128xf32>
    %40 = math.log %39 : vector<128x128xf32>
    %41 = arith.addf %31, %40 : vector<128x128xf32>
    %c0_19 = arith.constant 0 : index
    %c0_20 = arith.constant 0 : index
    %42 = vector.load %arg7[%c0_19, %c0_20] : memref<1x128xf32, #tpu.memory_space<vmem>>, vector<1x128xf32>
    %43 = vector.broadcast %42 : vector<1x128xf32> to vector<128x128xf32>
    %44 = arith.addf %43, %41 : vector<128x128xf32>
    %c0_21 = arith.constant 0 : index
    %c0_22 = arith.constant 0 : index
    %45 = vector.load %arg9[%c0_21, %c0_22] : memref<128x128xf32, #tpu.memory_space<vmem>>, vector<128x128xf32>
    tpu.vector_store %arg9[%c0_21, %c0_22], %44 {strides = array<i32>} : memref<128x128xf32, #tpu.memory_space<vmem>>, vector<128x128xf32>,
    return
  }
  func.func @transform_0(%arg0: i32, %arg1: i32) -> (i32, i32) {
    %c0_i32 = arith.constant 0 : i32
    %c0_i32_0 = arith.constant 0 : i32
    return %arg0, %c0_i32 : i32, i32
  }
  func.func @transform_1(%arg0: i32, %arg1: i32) -> (i32, i32) {
    %c0_i32 = arith.constant 0 : i32
    %c0_i32_0 = arith.constant 0 : i32
    return %c0_i32, %arg1 : i32, i32
  }
  func.func @transform_2(%arg0: i32, %arg1: i32) -> (i32, i32) {
    %c0_i32 = arith.constant 0 : i32
    %c0_i32_0 = arith.constant 0 : i32
    return %c0_i32, %arg1 : i32, i32
  }
  func.func @transform_3(%arg0: i32, %arg1: i32) -> (i32, i32) {
    %c0_i32 = arith.constant 0 : i32
    %c0_i32_0 = arith.constant 0 : i32
    return %c0_i32, %arg1 : i32, i32
  }
  func.func @transform_4(%arg0: i32, %arg1: i32) -> (i32, i32) {
    %c0_i32 = arith.constant 0 : i32
    %c0_i32_0 = arith.constant 0 : i32
    return %c0_i32, %arg1 : i32, i32
  }
  func.func @transform_5(%arg0: i32, %arg1: i32) -> (i32, i32) {
    %c0_i32 = arith.constant 0 : i32
    %c0_i32_0 = arith.constant 0 : i32
    return %c0_i32, %arg1 : i32, i32
  }
  func.func @transform_6(%arg0: i32, %arg1: i32) -> (i32, i32) {
    %c0_i32 = arith.constant 0 : i32
    return %arg0, %arg1 : i32, i32
  }
  func.func @transform_7(%arg0: i32, %arg1: i32) -> (i32, i32) {
    %c0_i32 = arith.constant 0 : i32
    return %arg0, %arg1 : i32, i32
  }
}

</mosaic_0001>

<bundles_post_ra>
// kernel: tpu_custom_call.1
= control target key start
LH: loop header
LB: loop body
LE: loop exit
PB: predicated region body
PF: predicated region fallthrough
CT: control target
= control target key end

     0   :  { %s3288_s0 = inlined_call_operand.vmem [shape: f32[256,32], index: 0, kind: input, shape index: {}]   ;;  %s3289_s1 = inlined_call_operand.vmem [shape: f32[32,512], index: 1, kind: input, shape index: {}]   ;;  %s3290_s2 = inlined_call_operand.vmem [shape: f32[32,512], index: 2, kind: input, shape index: {}]   ;;  %s3291_s3 = inlined_call_operand.vmem [shape: f32[32,256], index: 3, kind: input, shape index: {}]   ;;  %s3292_s4 = inlined_call_operand.vmem [shape: f32[1,512], index: 4, kind: input, shape index: {}]   ;;  %s3293_s5 = inlined_call_operand.vmem [shape: f32[1,256], index: 5, kind: input, shape index: {}]   ;;  %s3294_s6 = inlined_call_operand.hbm [shape: f32[256,256], index: 6, kind: output, shape index: {0}]   ;;  %s3295_s7 = inlined_call_operand.hbm [shape: f32[256,256], index: 7, kind: output, shape index: {1}]  }
   0x1   :  { %3301 = sst [smem:[#allocation13_spill]] %s3288_s0 }
   0x2   :  { %3302 = sst [smem:[#allocation14_spill]] %s3289_s1 }
   0x3   :  { %13 = vsyncpa [#allocation6], 0 }
   0x4   :  { %15 = vsyncpa [#allocation6 + $0x1], 0 }
   0x5   :  { %16 = vsyncpa [#allocation8], 0 }
   0x6   :  { %18 = vsyncpa [#allocation8 + $0x1], 0  ;;  %s2494_s24 = smov 0   ;;  %s2496_s25 = smov 0  }
   0x7   :  { %s2498_s26 = smov 0   ;;  %s2500_s27 = smov 0  }
   0x8   :  { %s2502_s28 = smov 0   ;;  %s2504_s29 = smov 0  }
   0x9   :  { %s2506_s30 = smov 0   ;;  %s2508_s8 = smov 0  }
   0xa   :  { %s2510_s9 = smov 0   ;;  %s2512_s10 = smov 0  }
   0xb LB: > { %s1836_s11 = sadd.s32 4294967295, %s2446_s10   ;;  %s1837_s12 = sadd.s32 4294967294, %s2446_s10   ;;  %s2446_s10 = sphi %s2512_s10, %s24_s10   ;;  %s2442_s9 = sphi %s2510_s9, %s3324_s9   ;;  %s2438_s8 = sphi %s2508_s8, %s3323_s8   ;;  %s2434_s30 = sphi %s2506_s30, %s3322_s30   ;;  %s2430_s29 = sphi %s2504_s29, %s3321_s29   ;;  %s2426_s28 = sphi %s2502_s28, %s3320_s28   ;;  %s2422_s27 = sphi %s2500_s27, %s3319_s27   ;;  %s2418_s26 = sphi %s2498_s26, %s3318_s26   ;;  %s2414_s25 = sphi %s2496_s25, %s3317_s25   ;;  %s2410_s24 = sphi %s2494_s24, %s3316_s24  }
   0xc   : > { %s33_s13 = sadd.s32 1, %s2438_s8  ;;  %s36_s14 = sadd.s32 1, %s2442_s9 }
   0xd   : > { %p34_p0 = scmp.ge.s32.totalorder %s33_s13, 2  ;;  %s69_s15 = sadd.s32 1, %s2426_s28 }
   0xe   : > { %p76_p1 = scmp.ne.s32.totalorder %s2426_s28, %s2422_s27  ;;  %p77_p2 = scmp.eq.s32.totalorder %s2446_s10, 0 }
   0xf   : > { %s3326_s13 = smov (%p34_p0, %s33_s13), 0  ;;  %s3328_s14 = smov (!%p34_p0, %s36_s14), %s2442_s9 }
  0x10   : > { %3303 = sst [smem:[#allocation11_spill]] %s3326_s13  ;;  %s66_s16 = ssub.s32 %s2438_s8, %s3326_s13 }
  0x11   : > { %p2557_p3 = por %p77_p2, %p76_p1  ;;  %p38_p4 = scmp.ge.s32.totalorder %s3328_s14, 2 }
  0x12   : > { %p67_p5 = scmp.eq.s32.totalorder %s66_s16, 0  ;;  %s201_s18 = sadd.s32 1, %s2418_s26 }
  0x13   : > { %p211_p6 = scmp.ne.s32.totalorder %s2418_s26, %s2414_s25  ;;  %s3330_s14 = smov (%p38_p4, %s3328_s14), 0 }
  0x14   : > { %3305 = sst [smem:[#allocation12_spill]] %s3330_s14  ;;  %s196_s20 = ssub.s32 %s2442_s9, %s3330_s14 }
  0x15   : > { %s2567_s19 = scalar_select %p67_p5, %s2426_s28, %s69_s15  }
  0x16   : > { %p212_p7 = scmp.eq.s32.totalorder %s1836_s11, 3  ;;  %s198_s21 = sor.u32 %s196_s20, %s66_s16 }
  0x17   : > { %p217_p8 = scmp.ne.s32.totalorder %s2414_s25, %s2410_s24  ;;  %p199_p9 = scmp.eq.s32.totalorder %s198_s21, 0 }
  0x18   : > { %p2573_p10 = por %p212_p7, %p211_p6  ;;  %p218_p11 = scmp.eq.s32.totalorder %s1837_s12, 3 }
  0x19   : > { %s2578_s23 = scalar_select %p199_p9, %s2418_s26, %s201_s18  }
  0x1a   : > { %p2580_p12 = por %p218_p11, %p217_p8  ;;  %p1839_p13 = scmp.ge.s32.totalorder %s2446_s10, 4 }
  0x1c   : > { %262 = sbr.rel (%p1839_p13) target bundleno = 64 (0x40), region = 16 }
  0x23   : > { %274 = sbr.rel (!%p2557_p3) target bundleno = 49 (0x31), region = 24  ;;  %s276_s11 = sand.u32 (%p2557_p3), 1, %s2426_s28  }
  0x24   : > { %s1932_s15 = sshll.u32 (%p2557_p3), %s2438_s8, 4  ;;  %s1840_s16 = sshll.u32 (%p2557_p3), %s276_s11, 6 }
  0x25   : > { %s3308_s1 = sld [smem:[#allocation14_spill]] (%p2557_p3)  ;;  %s278_s18 = scalar_lea.vmem (%p2557_p3), [#allocation2], %s1840_s16 }
  0x2b   : > { %s281_s12 = scalar_lea.vmem %s3308_s1, %s1932_s15 }
  0x2c   : > { %v294_v0 = vld [vmem:[%s281_s12] sm:$0xff]  ;;  %v296_v1 = vld [vmem:[%s281_s12 + $0x8] sm:$0xff] }
  0x2d   : > { %v298_v2 = vld [vmem:[%s281_s12 + $0x20] sm:$0xff]  ;;  %295 = vst [vmem:[%s278_s18] sm:$0xff] %v294_v0  ;;  %297 = vst [vmem:[%s278_s18 + $0x8] sm:$0xff] %v296_v1  ;;  %v300_v3 = vld [vmem:[%s281_s12 + $0x28] sm:$0xff] }
  0x2e   : > { %299 = vst [vmem:[%s278_s18 + $0x10] sm:$0xff] %v298_v2  ;;  %v302_v4 = vld [vmem:[%s281_s12 + $0x40] sm:$0xff]  ;;  %v304_v5 = vld [vmem:[%s281_s12 + $0x48] sm:$0xff]  ;;  %301 = vst [vmem:[%s278_s18 + $0x18] sm:$0xff] %v300_v3 }
  0x2f   : > { %303 = vst [vmem:[%s278_s18 + $0x20] sm:$0xff] %v302_v4  ;;  %305 = vst [vmem:[%s278_s18 + $0x28] sm:$0xff] %v304_v5  ;;  %v306_v6 = vld [vmem:[%s281_s12 + $0x60] sm:$0xff]  ;;  %v308_v7 = vld [vmem:[%s281_s12 + $0x68] sm:$0xff] }
  0x30   : > { %307 = vst [vmem:[%s278_s18 + $0x30] sm:$0xff] %v306_v6  ;;  %309 = vst [vmem:[%s278_s18 + $0x38] sm:$0xff] %v308_v7 }
  0x31 PF: > { %315 = sbr.rel (!%p2557_p3) target bundleno = 57 (0x39), region = 47  ;;  %s317_s11 = sand.u32 (%p2557_p3), 1, %s2426_s28  }
  0x32   : > { %s1933_s15 = sshll.u32 (%p2557_p3), %s2438_s8, 4  ;;  %s1843_s16 = sshll.u32 (%p2557_p3), %s317_s11, 6 }
  0x33   : > { %s322_s1 = scalar_lea.vmem (%p2557_p3), %s3290_s2, %s1933_s15  ;;  %s319_s14 = scalar_lea.vmem (%p2557_p3), [#allocation3], %s1843_s16 }
  0x34   : > { %v335_v8 = vld [vmem:[%s322_s1] sm:$0xff] (%p2557_p3)  ;;  %v337_v9 = vld [vmem:[%s322_s1 + $0x8] sm:$0xff] (%p2557_p3) }
  0x35   : > { %v339_v10 = vld [vmem:[%s322_s1 + $0x20] sm:$0xff] (%p2557_p3)  ;;  %336 = vst [vmem:[%s319_s14] sm:$0xff] (%p2557_p3), %v335_v8  ;;  %338 = vst [vmem:[%s319_s14 + $0x8] sm:$0xff] (%p2557_p3), %v337_v9  ;;  %v341_v11 = vld [vmem:[%s322_s1 + $0x28] sm:$0xff] (%p2557_p3) }
  0x36   : > { %340 = vst [vmem:[%s319_s14 + $0x10] sm:$0xff] (%p2557_p3), %v339_v10  ;;  %v343_v12 = vld [vmem:[%s322_s1 + $0x40] sm:$0xff] (%p2557_p3)  ;;  %v345_v13 = vld [vmem:[%s322_s1 + $0x48] sm:$0xff] (%p2557_p3)  ;;  %342 = vst [vmem:[%s319_s14 + $0x18] sm:$0xff] (%p2557_p3), %v341_v11 }
  0x37   : > { %344 = vst [vmem:[%s319_s14 + $0x20] sm:$0xff] (%p2557_p3), %v343_v12  ;;  %346 = vst [vmem:[%s319_s14 + $0x28] sm:$0xff] (%p2557_p3), %v345_v13  ;;  %v347_v14 = vld [vmem:[%s322_s1 + $0x60] sm:$0xff] (%p2557_p3)  ;;  %v349_v15 = vld [vmem:[%s322_s1 + $0x68] sm:$0xff] (%p2557_p3) }
  0x38   : > { %348 = vst [vmem:[%s319_s14 + $0x30] sm:$0xff] %v347_v14  ;;  %350 = vst [vmem:[%s319_s14 + $0x38] sm:$0xff] %v349_v15 }
  0x39 PF: > { %356 = sbr.rel (!%p2557_p3) target bundleno = 64 (0x40), region = 70  ;;  %s358_s12 = sand.u32 (%p2557_p3), 1, %s2426_s28  }
  0x3a   : > { %s1847_s18 = sshll.u32 (%p2557_p3), %s2438_s8, 3  ;;  %s1846_s11 = sshll.u32 (%p2557_p3), %s358_s12, 5 }
  0x3b   : > { %s362_s20 = scalar_lea.vmem (%p2557_p3), %s3291_s3, %s1847_s18  ;;  %s360_s21 = scalar_lea.vmem (%p2557_p3), [#allocation4], %s1846_s11 }
  0x3c   : > { %v396_v16 = vld [vmem:[%s362_s20] sm:$0xff] (%p2557_p3)  ;;  %v398_v17 = vld [vmem:[%s362_s20 + $0x10] sm:$0xff] (%p2557_p3) }
  0x3d   : > { %v400_v18 = vld [vmem:[%s362_s20 + $0x20] sm:$0xff] (%p2557_p3)  ;;  %397 = vst [vmem:[%s360_s21] sm:$0xff] (%p2557_p3), %v396_v16  ;;  %399 = vst [vmem:[%s360_s21 + $0x8] sm:$0xff] (%p2557_p3), %v398_v17  ;;  %v402_v19 = vld [vmem:[%s362_s20 + $0x30] sm:$0xff] (%p2557_p3) }
  0x3e   : > { %401 = vst [vmem:[%s360_s21 + $0x10] sm:$0xff] (%p2557_p3), %v400_v18  ;;  %403 = vst [vmem:[%s360_s21 + $0x18] sm:$0xff] (%p2557_p3), %v402_v19 }
  0x40 PF: > { %p1848_p0 = scmp.ge.s32.totalorder %s2446_s10, 1  ;;  %p422_p1 = scmp.lt.s32.totalorder %s2446_s10, 5 }
  0x42   : > { %p423_p2 = pnand %p1848_p0, %p422_p1 }
  0x43   : > { %s429_s1 = sand.u32 (!%p423_p2), 1, %s2422_s27   ;;  %s1854_s14 = sshll.u32 (!%p423_p2), %s2434_s30, 4  ;;  %v2448_v20 = vmov (!%p423_p2), 0.0   ;;  %vm585_vm0 = vcmask (!%p423_p2), 261120  }
  0x44   : > { %426 = sbr.rel (%p423_p2) target bundleno = 512 (0x200), region = 116  ;;  %s2610_s17 = sshll.u32 (!%p423_p2), %s429_s1, 6  ;;  %963 = vmatprep.mubr.f32.mxu1 (!%p423_p2), %v2448_v20 }
  0x45   : > { %s1851_s12 = sshll.u32 (!%p423_p2), %s429_s1, 5  ;;  %s438_s18 = scalar_lea.vmem (!%p423_p2), [#allocation3], %s2610_s17 }
  0x46   : > { %v820_v21 = vld [vmem:[%s438_s18 + $0x8] sm:$0xff] (!%p423_p2)  ;;  %v822_v22 = vld [vmem:[%s438_s18 + $0x18] sm:$0xff] (!%p423_p2)  ;;  %v819_v23 = vld [vmem:[%s438_s18] sm:$0xff] (!%p423_p2)  ;;  %p500_p3 = scmp.lt.s32.totalorder (!%p423_p2), %s1854_s14, 31  ;;  %s445_s11 = scalar_lea.vmem (!%p423_p2), [#allocation4], %s1851_s12 }
  0x47   : > { %v581_v24 = vld [vmem:[%s445_s11] sm:$0xff] (!%p423_p2)  ;;  %v582_v25 = vld [vmem:[%s445_s11 + $0x8] sm:$0xff] (!%p423_p2)  ;;  %v1996_v26 = vpack.c.bf16 (!%p423_p2), %v822_v22, %v820_v21  ;;  %v821_v27 = vld [vmem:[%s438_s18 + $0x10] sm:$0xff] (!%p423_p2)  ;;  %s2622_s15 = scalar_lea.vmem (!%p423_p2), [#allocation2], %s2610_s17  ;;  %s3309_s0 = sld [smem:[#allocation13_spill]] (!%p423_p2) }
  0x48   : > { %v1988_v28 = vpack.c.bf16 (!%p423_p2), %v582_v25, %v581_v24  ;;  %v2614_v29 = vpack.c.bf16 (!%p423_p2), %v821_v27, %v819_v23  ;;  %v583_v30 = vld [vmem:[%s445_s11 + $0x10] sm:$0xff] (!%p423_p2)  ;;  %v584_v31 = vld [vmem:[%s445_s11 + $0x18] sm:$0xff] (!%p423_p2)  ;;  %v824_v32 = vld [vmem:[%s438_s18 + $0x28] sm:$0xff] (!%p423_p2)  ;;  %s2837_s1 = sand.u32 (!%p423_p2), 1, %s2414_s25   ;;  %s1856_s12 = sshll.u32 (!%p423_p2), %s2430_s29, 1 }
  0x49   : > { %2012 = vmatprep.subr.bf16.mxu1 (!%p423_p2), %v1996_v26  ;;  %v1992_v33 = vpack.c.bf16 (!%p423_p2), %v584_v31, %v583_v30  ;;  %v826_v34 = vld [vmem:[%s438_s18 + $0x38] sm:$0xff] (!%p423_p2)  ;;  %v823_v35 = vld [vmem:[%s438_s18 + $0x20] sm:$0xff] (!%p423_p2)  ;;  %v825_v36 = vld [vmem:[%s438_s18 + $0x30] sm:$0xff] (!%p423_p2)  ;;  %p508_p4 = scmp.lt.s32.totalorder (!%p423_p2), %s1856_s12, 3 }
  0x4a   : > { %1989 = vmatprep.subr.bf16.mxu0 (!%p423_p2), %v1988_v28  ;;  %2014 = vmatpush1.bf16.msra.mxu1 (!%p423_p2), %v2614_v29  ;;  %v2617_v37 = vpack.c.bf16 (!%p423_p2), %v826_v34, %v824_v32  ;;  %v2619_v38 = vpack.c.bf16 (!%p423_p2), %v825_v36, %v823_v35  ;;  %v812_v39 = vld [vmem:[%s2622_s15 + $0x8] sm:$0xff] (!%p423_p2)  ;;  %v814_v40 = vld [vmem:[%s2622_s15 + $0x18] sm:$0xff] (!%p423_p2)  ;;  %v811_v42 = vld [vmem:[%s2622_s15] sm:$0xff] (!%p423_p2) }
  0x4b   : > { %s3332_s14 = smov (!%p500_p3, %s1854_s14), 31  ;;  %1991 = vmatpush3.bf16.msra.mxu0 %v1988_v28  ;;  %v2004_v41 = vpack.c.bf16 %v814_v40, %v812_v39  ;;  %v813_v43 = vld [vmem:[%s2622_s15 + $0x10] sm:$0xff]  ;;  %v816_v47 = vld [vmem:[%s2622_s15 + $0x28] sm:$0xff]  ;;  %v818_v48 = vld [vmem:[%s2622_s15 + $0x38] sm:$0xff]  ;;  %s3334_s12 = smov (!%p508_p4, %s1856_s12), 3 }
  0x4c   : > { %s1855_s27 = sshll.u32 %s3332_s14, 3  ;;  %1993 = vmatprep.subr.bf16.mxu0 %v1992_v33  ;;  %2013 = vmatprep.subr.bf16.mxu1 %v2617_v37  ;;  %v2006_v60 = vpack.c.bf16 %v813_v43, %v811_v42  ;;  %v2008_v1 = vpack.c.bf16 %v818_v48, %v816_v47  ;;  %v815_v7 = vld [vmem:[%s2622_s15 + $0x20] sm:$0xff]  ;;  %v817_v8 = vld [vmem:[%s2622_s15 + $0x30] sm:$0xff]  ;;  %s3299_s14 = sshll.u32 %s2837_s1, 7 }
  0x4d   : > { %s2629_s21 = scalar_lea.vmem %s3309_s0, %s1855_s27  ;;  %v2010_v17 = vpack.c.bf16 %v817_v8, %v815_v7  ;;  %s2842_s17 = scalar_lea.vmem [#allocation5], %s3299_s14 }
  0x4e   : > { %v517_v44 = vld [vmem:[%s2629_s21] sm:$0xff]  ;;  %v518_v45 = vld [vmem:[%s2629_s21 + $0x8] sm:$0xff]  ;;  %2015 = vmatpush1.bf16.msra.mxu1 %v2619_v38  ;;  %v519_v52 = vld [vmem:[%s2629_s21 + $0x10] sm:$0xff]  ;;  %s510_s27 = scalar_lea.vmem %s3292_s4, %s3334_s12  ;;  %s1934_s15 = sshll.u32 %s2434_s30, 5 }
  0x4f   : > { %v529_v46 = vld [vmem:[%s2629_s21 + $0x60] sm:$0xff]  ;;  %vm533_vm1 = vcmp.ge.f32.partialorder %v517_v44, 0.0  ;;  %v549_v49 = vmul.f32 0.2, %v517_v44  ;;  %vm534_vm2 = vcmp.ge.f32.partialorder %v518_v45, 0.0  ;;  %v520_v53 = vld [vmem:[%s2629_s21 + $0x18] sm:$0xff]  ;;  %1995 = vmatpush3.bf16.msra.mxu0 %v1992_v33  ;;  %2005 = vmatprep.subr.bf16.mxu1 %v2004_v41  ;;  %s2941_s16 = sadd.s32 %s2430_s29, %s1934_s15 }
  0x50   : > { %v550_v50 = vmul.f32 0.2, %v518_v45  ;;  %vm545_vm3 = vcmp.ge.f32.partialorder %v529_v46, 0.0  ;;  %v561_v51 = vmul.f32 0.2, %v529_v46  ;;  %v530_v54 = vld [vmem:[%s2629_s21 + $0x68] sm:$0xff]  ;;  %1997 = vmatprep.subr.bf16.mxu0 %v1996_v26 }
  0x51   : > { %v2643_v55 = vsel %vm533_vm1, %v517_v44, %v549_v49  ;;  %vm535_vm4 = vcmp.ge.f32.partialorder %v519_v52, 0.0  ;;  %v551_v57 = vmul.f32 0.2, %v519_v52  ;;  %v521_v58 = vld [vmem:[%s2629_s21 + $0x20] sm:$0xff]  ;;  %vm536_vm5 = vcmp.ge.f32.partialorder %v520_v53, 0.0  ;;  %v522_v61 = vld [vmem:[%s2629_s21 + $0x28] sm:$0xff] }
  0x52   : > { %v2645_v56 = vsel %vm534_vm2, %v518_v45, %v550_v50  ;;  %1964 = vmatprep.mubr.msk.f32.mxu0 %vm585_vm0, %v2643_v55  ;;  %v2650_v59 = vsel %vm545_vm3, %v529_v46, %v561_v51  ;;  %v531_v62 = vld [vmem:[%s2629_s21 + $0x70] sm:$0xff]  ;;  %v552_v0 = vmul.f32 0.2, %v520_v53  ;;  %vm546_vm6 = vcmp.ge.f32.partialorder %v530_v54, 0.0  ;;  %v524_v12 = vld [vmem:[%s2629_s21 + $0x38] sm:$0xff]  ;;  %v525_v14 = vld [vmem:[%s2629_s21 + $0x40] sm:$0xff] }
  0x53   : > { %1885 = vmatmul.mubr.msk.f32.vlgmr.msra.gmra.mrb[0].mxu1 %vm585_vm0, %v2650_v59  ;;  %v2656_v63 = vsel %vm535_vm4, %v519_v52, %v551_v57  ;;  %1965 = vmatmul.mubr.msk.f32.vlgmr.msra.gmra.mrb[0].mxu0 %vm585_vm0, %v2645_v56  ;;  %v562_v2 = vmul.f32 0.2, %v530_v54  ;;  %vm537_vm7 = vcmp.ge.f32.partialorder %v521_v58, 0.0  ;;  %v553_v3 = vmul.f32 0.2, %v521_v58  ;;  %v523_v4 = vld [vmem:[%s2629_s21 + $0x30] sm:$0xff] }
  0x54   : > { %969 = vmatprep.mubr.f32.mxu1 %v2448_v20  ;;  %1999 = vmatpush1.bf16.msra.mxu0 %v2614_v29  ;;  %v2666_v5 = vsel %vm536_vm5, %v520_v53, %v552_v0  ;;  %v554_v6 = vmul.f32 0.2, %v522_v61  ;;  %vm547_vm8 = vcmp.ge.f32.partialorder %v531_v62, 0.0  ;;  %vm538_vm9 = vcmp.ge.f32.partialorder %v522_v61, 0.0  ;;  %v532_v13 = vld [vmem:[%s2629_s21 + $0x78] sm:$0xff]  ;;  %v526_v24 = vld [vmem:[%s2629_s21 + $0x48] sm:$0xff] }
  0x55   : > { %1967 = vmatprep.mubr.msk.f32.mxu0 %vm585_vm0, %v2656_v63  ;;  %2007 = vmatpush1.bf16.msra.mxu1 %v2006_v60  ;;  %v2671_v9 = vsel %vm546_vm6, %v530_v54, %v562_v2  ;;  %v2673_v10 = vsel %vm537_vm7, %v521_v58, %v553_v3  ;;  %v563_v11 = vmul.f32 0.2, %v531_v62  ;;  %vm539_vm10 = vcmp.ge.f32.partialorder %v523_v4, 0.0  ;;  %v527_v25 = vld [vmem:[%s2629_s21 + $0x50] sm:$0xff]  ;;  %v528_v31 = vld [vmem:[%s2629_s21 + $0x58] sm:$0xff]  ;;  %s1637_s20 = sshll.u32 %s2842_s17, 4  ;;  %s2948_s20 = int_to_ptr.vmem [resolvable:$true] %s1637_s20 }
  0x56   : > { %2001 = vmatprep.subr.bf16.mxu0 %v2617_v37  ;;  %2009 = vmatprep.subr.bf16.mxu1 %v2008_v1  ;;  %v555_v16 = vmul.f32 0.2, %v523_v4  ;;  %v2689_v18 = vsel %vm538_vm9, %v522_v61, %v554_v6  ;;  %v556_v19 = vmul.f32 0.2, %v524_v12  ;;  %vm548_vm11 = vcmp.ge.f32.partialorder %v532_v13, 0.0  ;;  %s3298_s21 = sshll.u32 %s2941_s16, 7 }
  0x57   : > { %1886 = vmatmul.mubr.msk.f32.gmra.mrb[2].mxu1 %vm585_vm0, %v2671_v9  ;;  %1968 = vmatmul.mubr.msk.f32.gmra.mrb[2].mxu0 %vm585_vm0, %v2666_v5  ;;  %v2685_v15 = vsel %vm547_vm8, %v531_v62, %v563_v11  ;;  %vm540_vm12 = vcmp.ge.f32.partialorder %v524_v12, 0.0  ;;  %v564_v22 = vmul.f32 0.2, %v532_v13  ;;  %v557_v23 = vmul.f32 0.2, %v525_v14  ;;  %s2960_s12 = scalar_lea.hbm %s3294_s6, %s3298_s21  ;;  %s2304_s11 = scalar_lea.vmem %s2948_s20, 2048 }
  0x58   : > { %975 = vmatprep.mubr.f32.mxu1 %v2448_v20  ;;  %1970 = vmatprep.mubr.msk.f32.mxu0 %vm585_vm0, %v2673_v10  ;;  %v2692_v21 = vsel %vm539_vm10, %v523_v4, %v555_v16  ;;  %vm541_vm13 = vcmp.ge.f32.partialorder %v525_v14, 0.0  ;;  %v2705_v27 = vsel %vm540_vm12, %v524_v12, %v556_v19  ;;  %v558_v28 = vmul.f32 0.2, %v526_v24  ;;  %p2305_p5 = scmp.ne.s32.totalorder %s2948_s20, %s2304_s11 }
  0x59   : > { %2003 = vmatpush1.bf16.msra.mxu0 %v2619_v38  ;;  %2011 = vmatpush1.bf16.msra.mxu1 %v2010_v17  ;;  %v2701_v26 = vsel %vm548_vm11, %v532_v13, %v564_v22  ;;  %v2707_v29 = vsel %vm541_vm13, %v525_v14, %v557_v23  ;;  %vm542_vm14 = vcmp.ge.f32.partialorder %v526_v24, 0.0  ;;  %v559_v30 = vmul.f32 0.2, %v527_v25  ;;  %v1197_v13 = vld [vmem:[%s510_s27] sm:$0x3]  ;;  %s2449_s27 = smov [#allocation5]  }
  0x5a   : > { %v795_v32 = vmul.f32 %v2643_v55, %v2643_v55  ;;  %vm543_vm15 = vcmp.ge.f32.partialorder %v527_v25, 0.0  ;;  %v2719_v33 = vsel %vm542_vm14, %v526_v24, %v558_v28  ;;  %v560_v34 = vmul.f32 0.2, %v528_v31  ;;  %p2306_p6 = pnand %p2305_p5, %p2573_p10  ;;  %s2308_s15 = sshll.u32 %s2449_s27, 4  ;;  %s2309_s15 = int_to_ptr.vmem [resolvable:$false] %s2308_s15 }
  0x5b   : > { %1887 = vmatmul.mubr.msk.f32.gmra.mrb[4].mxu1 %vm585_vm0, %v2685_v15  ;;  %1971 = vmatmul.mubr.msk.f32.gmra.mrb[4].mxu0 %vm585_vm0, %v2689_v18  ;;  %v2721_v35 = vsel %vm543_vm15, %v527_v25, %v559_v30  ;;  %vm544_vm1 = vcmp.ge.f32.partialorder %v528_v31, 0.0  ;;  %v796_v36 = vmul.f32 %v2645_v56, %v2645_v56  ;;  %v797_v38 = vmul.f32 %v2656_v63, %v2656_v63  ;;  %s2310_s30 = scalar_lea.vmem %s2309_s15, 4096  ;;  %p2311_p8 = scmp.lt.s32.totalorder %s2948_s20, %s2309_s15 }
  0x5c   : > { %981 = vmatprep.mubr.f32.mxu1 %v2448_v20  ;;  %1973 = vmatprep.mubr.msk.f32.mxu0 %vm585_vm0, %v2692_v21  ;;  %v2731_v37 = vsel %vm544_vm1, %v528_v31, %v560_v34  ;;  %v798_v39 = vmul.f32 %v2666_v5, %v2666_v5  ;;  %v799_v40 = vmul.f32 %v2673_v10, %v2673_v10  ;;  %v1199_v0 = vlaneseq  ;;  %p2307_p7 = pneg %p2306_p6  ;;  %p2312_p9 = scmp.lt.s32.totalorder %s2310_s30, %s2304_s11 }
  0x5d   : > { %v800_v41 = vmul.f32 %v2689_v18, %v2689_v18  ;;  %v801_v42 = vmul.f32 %v2692_v21, %v2692_v21  ;;  %v802_v43 = vmul.f32 %v2705_v27, %v2705_v27  ;;  %v803_v44 = vmul.f32 %v2707_v29, %v2707_v29 }
  0x5e   : > { %v804_v45 = vmul.f32 %v2719_v33, %v2719_v33  ;;  %v805_v46 = vmul.f32 %v2721_v35, %v2721_v35  ;;  %v806_v47 = vmul.f32 %v2731_v37, %v2731_v37  ;;  %v807_v48 = vmul.f32 %v2650_v59, %v2650_v59  ;;  %p2313_p11 = por %p2312_p9, %p2311_p8 }
  0x5f   : > { %1888 = vmatmul.mubr.msk.f32.gmra.mrb[6].mxu1 %vm585_vm0, %v2701_v26  ;;  %1974 = vmatmul.mubr.msk.f32.gmra.mrb[6].mxu0 %vm585_vm0, %v2705_v27  ;;  %v808_v49 = vmul.f32 %v2671_v9, %v2671_v9  ;;  %v809_v50 = vmul.f32 %v2685_v15, %v2685_v15  ;;  %v810_v51 = vmul.f32 %v2701_v26, %v2701_v26 }
  0x60   : > { %1100 = vmatprep.mubr.f32.mxu1 %v2448_v20  ;;  %1976 = vmatprep.mubr.msk.f32.mxu0 %vm585_vm0, %v2707_v29  ;;  %p2314_p13 = pnand %p2313_p11, %p2307_p7 }
  0x63   : > { %1889 = vmatmul.mubr.msk.f32.vlgmr.msra.gmra.mrb[8].mxu1 %vm585_vm0, %v795_v32  ;;  %1977 = vmatmul.mubr.msk.f32.gmra.mrb[8].mxu0 %vm585_vm0, %v2719_v33 }
  0x64   : > { %1106 = vmatprep.mubr.f32.mxu1 %v2448_v20  ;;  %1979 = vmatprep.mubr.msk.f32.mxu0 %vm585_vm0, %v2721_v35 }
  0x67   : > { %1890 = vmatmul.mubr.msk.f32.gmra.mrb[10].mxu1 %vm585_vm0, %v796_v36  ;;  %1980 = vmatmul.mubr.msk.f32.gmra.mrb[10].mxu0 %vm585_vm0, %v2731_v37 }
  0x68   : > { %1112 = vmatprep.mubr.f32.mxu1 %v2448_v20  ;;  %1982 = vmatprep.mubr.msk.f32.mxu0 %vm585_vm0, %v2650_v59 }
  0x6b   : > { %1891 = vmatmul.mubr.msk.f32.gmra.mrb[12].mxu1 %vm585_vm0, %v797_v38  ;;  %1983 = vmatmul.mubr.msk.f32.gmra.mrb[12].mxu0 %vm585_vm0, %v2671_v9 }
  0x6c   : > { %1118 = vmatprep.mubr.f32.mxu1 %v2448_v20  ;;  %1985 = vmatprep.mubr.msk.f32.mxu0 %vm585_vm0, %v2685_v15 }
  0x6f   : > { %1892 = vmatmul.mubr.msk.f32.gmra.mrb[14].mxu1 %vm585_vm0, %v798_v39  ;;  %1986 = vmatmul.mubr.msk.f32.gmra.mrb[14].mxu0 %vm585_vm0, %v2701_v26 }
  0x70   : > { %1124 = vmatprep.mubr.f32.mxu1 %v2448_v20  ;;  %891 = vmatprep.mubr.f32.mxu0 %v2448_v20 }
  0x73   : > { %1893 = vmatmul.mubr.msk.f32.gmra.mrb[16].mxu1 %vm585_vm0, %v799_v40  ;;  %1873 = vmatmul.mubr.msk.f32.vlgmr.msra.gmra.mrb[16].mxu0 %vm585_vm0, %v2643_v55 }
  0x74   : > { %1130 = vmatprep.mubr.f32.mxu1 %v2448_v20  ;;  %897 = vmatprep.mubr.f32.mxu0 %v2448_v20 }
  0x77   : > { %1894 = vmatmul.mubr.msk.f32.gmra.mrb[18].mxu1 %vm585_vm0, %v800_v41  ;;  %1874 = vmatmul.mubr.msk.f32.gmra.mrb[18].mxu0 %vm585_vm0, %v2645_v56 }
  0x78   : > { %1136 = vmatprep.mubr.f32.mxu1 %v2448_v20  ;;  %903 = vmatprep.mubr.f32.mxu0 %v2448_v20 }
  0x7b   : > { %1895 = vmatmul.mubr.msk.f32.gmra.mrb[20].mxu1 %vm585_vm0, %v801_v42  ;;  %1875 = vmatmul.mubr.msk.f32.gmra.mrb[20].mxu0 %vm585_vm0, %v2656_v63 }
  0x7c   : > { %1142 = vmatprep.mubr.f32.mxu1 %v2448_v20  ;;  %909 = vmatprep.mubr.f32.mxu0 %v2448_v20 }
  0x7f   : > { %1896 = vmatmul.mubr.msk.f32.gmra.mrb[22].mxu1 %vm585_vm0, %v802_v43  ;;  %1876 = vmatmul.mubr.msk.f32.gmra.mrb[22].mxu0 %vm585_vm0, %v2666_v5  ;;  %v1200_v5 = vshrl.u32 %v1199_v0, 7 }
  0x80   : > { %1148 = vmatprep.mubr.f32.mxu1 %v2448_v20  ;;  %915 = vmatprep.mubr.f32.mxu0 %v2448_v20 }
  0x81   : > { %v1205_v14 = vsub.s32 1, %v1200_v5 }
  0x83   : > { %1897 = vmatmul.mubr.msk.f32.gmra.mrb[24].mxu1 %vm585_vm0, %v803_v44  ;;  %1877 = vmatmul.mubr.msk.f32.gmra.mrb[24].mxu0 %vm585_vm0, %v2673_v10  ;;  %v1201_v10 = vsub.s32 0, %v1200_v5  ;;  %v2866_v19 = vrot.slane %v1197_v13, %v1205_v14 }
  0x84   : > { %1154 = vmatprep.mubr.f32.mxu1 %v2448_v20  ;;  %921 = vmatprep.mubr.f32.mxu0 %v2448_v20 }
  0x85   : > { %v2864_v16 = vrot.slane %v1197_v13, %v1201_v10 }
  0x87   : > { %1898 = vmatmul.mubr.msk.f32.gmra.mrb[26].mxu1 %vm585_vm0, %v804_v45  ;;  %1878 = vmatmul.mubr.msk.f32.gmra.mrb[26].mxu0 %vm585_vm0, %v2689_v18 }
  0x88   : > { %1160 = vmatprep.mubr.f32.mxu1 %v2448_v20  ;;  %927 = vmatprep.mubr.f32.mxu0 %v2448_v20 }
  0x8b   : > { %1899 = vmatmul.mubr.msk.f32.gmra.mrb[28].mxu1 %vm585_vm0, %v805_v46  ;;  %1879 = vmatmul.mubr.msk.f32.gmra.mrb[28].mxu0 %vm585_vm0, %v2692_v21 }
  0x8c   : > { %1166 = vmatprep.mubr.f32.mxu1 %v2448_v20  ;;  %933 = vmatprep.mubr.f32.mxu0 %v2448_v20 }
  0x8f   : > { %1900 = vmatmul.mubr.msk.f32.gmra.mrb[30].mxu1 %vm585_vm0, %v806_v47  ;;  %1880 = vmatmul.mubr.msk.f32.gmra.mrb[30].mxu0 %vm585_vm0, %v2705_v27 }
  0x90   : > { %1172 = vmatprep.mubr.f32.mxu1 %v2448_v20  ;;  %939 = vmatprep.mubr.f32.mxu0 %v2448_v20 }
  0x93   : > { %1901 = vmatmul.mubr.msk.f32.gmra.mrb[0].mxu1 %vm585_vm0, %v807_v48  ;;  %1881 = vmatmul.mubr.msk.f32.gmra.mrb[32].mxu0 %vm585_vm0, %v2707_v29 }
  0x94   : > { %1178 = vmatprep.mubr.f32.mxu1 %v2448_v20  ;;  %945 = vmatprep.mubr.f32.mxu0 %v2448_v20 }
  0x97   : > { %1902 = vmatmul.mubr.msk.f32.gmra.mrb[2].mxu1 %vm585_vm0, %v808_v49  ;;  %1882 = vmatmul.mubr.msk.f32.gmra.mrb[34].mxu0 %vm585_vm0, %v2719_v33 }
  0x98   : > { %1184 = vmatprep.mubr.f32.mxu1 %v2448_v20  ;;  %951 = vmatprep.mubr.f32.mxu0 %v2448_v20 }
  0x9b   : > { %1903 = vmatmul.mubr.msk.f32.gmra.mrb[4].mxu1 %vm585_vm0, %v809_v50  ;;  %1883 = vmatmul.mubr.msk.f32.gmra.mrb[36].mxu0 %vm585_vm0, %v2721_v35 }
  0x9c   : > { %1190 = vmatprep.mubr.f32.mxu1 %v2448_v20  ;;  %957 = vmatprep.mubr.f32.mxu0 %v2448_v20 }
  0x9f   : > { %1904 = vmatmul.mubr.msk.f32.gmra.mrb[6].mxu1 %vm585_vm0, %v810_v51  ;;  %1884 = vmatmul.mubr.msk.f32.gmra.mrb[38].mxu0 %vm585_vm0, %v2731_v37 }
 0x126   : > { %v1966_v52 = vpop.f32.mrb[0].mxu0 }
 0x127   : > { %780 = vst [vmem:[%s2842_s17 + $0x8] sm:$0xff] %v1966_v52  ;;  %v700_v20 = vpop.f32.mrb[1].mxu0 }
 0x128   : > { %779 = vst [vmem:[%s2842_s17] sm:$0xff] %v700_v20 }
 0x12a   : > { %v1969_v53 = vpop.f32.mrb[2].mxu0 }
 0x12b   : > { %782 = vst [vmem:[%s2842_s17 + $0x18] sm:$0xff] %v1969_v53  ;;  %v710_v54 = vpop.f32.mrb[3].mxu0 }
 0x12c   : > { %781 = vst [vmem:[%s2842_s17 + $0x10] sm:$0xff] %v710_v54 }
 0x12e   : > { %v1972_v55 = vpop.f32.mrb[4].mxu0 }
 0x12f   : > { %784 = vst [vmem:[%s2842_s17 + $0x28] sm:$0xff] %v1972_v55  ;;  %v720_v56 = vpop.f32.mrb[5].mxu0 }
 0x130   : > { %783 = vst [vmem:[%s2842_s17 + $0x20] sm:$0xff] %v720_v56 }
 0x132   : > { %v1975_v57 = vpop.f32.mrb[6].mxu0 }
 0x133   : > { %786 = vst [vmem:[%s2842_s17 + $0x38] sm:$0xff] %v1975_v57  ;;  %v730_v58 = vpop.f32.mrb[7].mxu0 }
 0x134   : > { %785 = vst [vmem:[%s2842_s17 + $0x30] sm:$0xff] %v730_v58 }
 0x136   : > { %v1102_v59 = vpop.f32.mrb[8].mxu1  ;;  %v1978_v60 = vpop.f32.mrb[8].mxu0 }
 0x137   : > { %v1104_v61 = vpop.f32.mrb[9].mxu1  ;;  %788 = vst [vmem:[%s2842_s17 + $0x48] sm:$0xff] %v1978_v60  ;;  %v740_v62 = vpop.f32.mrb[9].mxu0 }
 0x138   : > { %787 = vst [vmem:[%s2842_s17 + $0x40] sm:$0xff] %v740_v62 }
 0x13a   : > { %v1108_v63 = vpop.f32.mrb[10].mxu1  ;;  %v1981_v1 = vpop.f32.mrb[10].mxu0 }
 0x13b   : > { %v1110_v2 = vpop.f32.mrb[11].mxu1  ;;  %790 = vst [vmem:[%s2842_s17 + $0x58] sm:$0xff] %v1981_v1  ;;  %v750_v3 = vpop.f32.mrb[11].mxu0 }
 0x13c   : > { %789 = vst [vmem:[%s2842_s17 + $0x50] sm:$0xff] %v750_v3 }
 0x13e   : > { %v1114_v4 = vpop.f32.mrb[12].mxu1  ;;  %v1984_v6 = vpop.f32.mrb[12].mxu0 }
 0x13f   : > { %v1116_v7 = vpop.f32.mrb[13].mxu1  ;;  %792 = vst [vmem:[%s2842_s17 + $0x68] sm:$0xff] %v1984_v6  ;;  %v760_v8 = vpop.f32.mrb[13].mxu0 }
 0x140   : > { %791 = vst [vmem:[%s2842_s17 + $0x60] sm:$0xff] %v760_v8 }
 0x142   : > { %v1120_v9 = vpop.f32.mrb[14].mxu1  ;;  %v1987_v11 = vpop.f32.mrb[14].mxu0 }
 0x143   : > { %v1122_v12 = vpop.f32.mrb[15].mxu1  ;;  %794 = vst [vmem:[%s2842_s17 + $0x78] sm:$0xff] %v1987_v11  ;;  %v770_v15 = vpop.f32.mrb[15].mxu0 }
 0x144   : > { %793 = vst [vmem:[%s2842_s17 + $0x70] sm:$0xff] %v770_v15 }
 0x146   : > { %v1126_v17 = vpop.f32.mrb[16].mxu1  ;;  %v893_v18 = vpop.f32.mrb[16].mxu0 }
 0x147   : > { %v1128_v21 = vpop.f32.mrb[17].mxu1  ;;  %v1103_v22 = vadd.f32 %v1102_v59, %v893_v18  ;;  %v895_v23 = vpop.f32.mrb[17].mxu0 }
 0x148   : > { %v1105_v24 = vadd.f32 %v1104_v61, %v895_v23 }
 0x149   : > { %v1209_v25 = vadd.f32 %v2864_v16, %v1103_v22 }
 0x14a   : > { %v1132_v26 = vpop.f32.mrb[18].mxu1  ;;  %v1210_v27 = vadd.f32 %v2866_v19, %v1105_v24  ;;  %v899_v28 = vpop.f32.mrb[18].mxu0 }
 0x14b   : > { %v2870_v29 = vpop.f32.mrb[19].mxu1  ;;  %v1109_v30 = vadd.f32 %v1108_v63, %v899_v28  ;;  %v901_v31 = vpop.f32.mrb[19].mxu0 }
 0x14c   : > { %v2872_v32 = vmax.f32 %v1209_v25, %v1210_v27  ;;  %v1111_v33 = vadd.f32 %v1110_v2, %v901_v31 }
 0x14d   : > { %v1211_v34 = vadd.f32 %v2864_v16, %v1109_v30 }
 0x14e   : > { %v2875_v35 = vpop.f32.mrb[20].mxu1  ;;  %v1257_v36 = vsub.f32 %v1209_v25, %v2872_v32  ;;  %v1305_v37 = vsub.f32 %v1210_v27, %v2872_v32  ;;  %v1212_v38 = vadd.f32 %v2866_v19, %v1111_v33  ;;  %v905_v39 = vpop.f32.mrb[20].mxu0 }
 0x14f   : > { %v2880_v40 = vpop.f32.mrb[21].mxu1  ;;  %v1115_v41 = vadd.f32 %v1114_v4, %v905_v39  ;;  %v907_v42 = vpop.f32.mrb[21].mxu0 }
 0x150   : > { %v1273_v43 = vmul.f32 1.442695, %v1257_v36  ;;  %v1321_v44 = vmul.f32 1.442695, %v1305_v37  ;;  %v2882_v45 = vmax.f32 %v1211_v34, %v1212_v38  ;;  %v1117_v46 = vadd.f32 %v1116_v7, %v907_v42 }
 0x151   : > { %v1213_v47 = vadd.f32 %v2864_v16, %v1115_v41 }
 0x152   : > { %v2885_v48 = vpop.f32.mrb[22].mxu1  ;;  %2144 = vpow2.f32 %v1273_v43  ;;  %v1258_v49 = vsub.f32 %v1211_v34, %v2882_v45  ;;  %v1306_v50 = vsub.f32 %v1212_v38, %v2882_v45  ;;  %v1214_v51 = vadd.f32 %v2866_v19, %v1117_v46  ;;  %v911_v52 = vpop.f32.mrb[22].mxu0 }
 0x153   : > { %v2890_v20 = vpop.f32.mrb[23].mxu1  ;;  %2146 = vpow2.f32 %v1321_v44  ;;  %v1121_v53 = vadd.f32 %v1120_v9, %v911_v52  ;;  %v913_v54 = vpop.f32.mrb[23].mxu0 }
 0x154   : > { %v1275_v55 = vmul.f32 1.442695, %v1258_v49  ;;  %v1323_v56 = vmul.f32 1.442695, %v1306_v50  ;;  %v2892_v57 = vmax.f32 %v1213_v47, %v1214_v51  ;;  %v1123_v58 = vadd.f32 %v1122_v12, %v913_v54 }
 0x155   : > { %v1215_v59 = vadd.f32 %v2864_v16, %v1121_v53 }
 0x156   : > { %v2895_v60 = vpop.f32.mrb[24].mxu1  ;;  %2148 = vpow2.f32 %v1275_v55  ;;  %v1259_v61 = vsub.f32 %v1213_v47, %v2892_v57  ;;  %v1307_v62 = vsub.f32 %v1214_v51, %v2892_v57  ;;  %v1216_v63 = vadd.f32 %v2866_v19, %v1123_v58  ;;  %v917_v0 = vpop.f32.mrb[24].mxu0 }
 0x157   : > { %v2900_v1 = vpop.f32.mrb[25].mxu1  ;;  %2150 = vpow2.f32 %v1323_v56  ;;  %v1127_v2 = vadd.f32 %v1126_v17, %v917_v0  ;;  %v919_v3 = vpop.f32.mrb[25].mxu0 }
 0x158   : > { %v1277_v4 = vmul.f32 1.442695, %v1259_v61  ;;  %v1325_v5 = vmul.f32 1.442695, %v1307_v62  ;;  %v2902_v6 = vmax.f32 %v1215_v59, %v1216_v63  ;;  %v1129_v7 = vadd.f32 %v1128_v21, %v919_v3 }
 0x159   : > { %v1217_v8 = vadd.f32 %v2864_v16, %v1127_v2 }
 0x15a   : > { %v2905_v9 = vpop.f32.mrb[26].mxu1  ;;  %2152 = vpow2.f32 %v1277_v4  ;;  %v1260_v10 = vsub.f32 %v1215_v59, %v2902_v6  ;;  %v1308_v11 = vsub.f32 %v1216_v63, %v2902_v6  ;;  %v1218_v12 = vadd.f32 %v2866_v19, %v1129_v7  ;;  %v923_v13 = vpop.f32.mrb[26].mxu0 }
 0x15b   : > { %v2910_v14 = vpop.f32.mrb[27].mxu1  ;;  %2154 = vpow2.f32 %v1325_v5  ;;  %v1133_v15 = vadd.f32 %v1132_v26, %v923_v13  ;;  %v925_v17 = vpop.f32.mrb[27].mxu0 }
 0x15c   : > { %v2145_v18 = vpop.eup %2144  ;;  %v1279_v22 = vmul.f32 1.442695, %v1260_v10  ;;  %v1327_v21 = vmul.f32 1.442695, %v1308_v11  ;;  %v2912_v23 = vmax.f32 %v1217_v8, %v1218_v12  ;;  %v1135_v24 = vadd.f32 %v2870_v29, %v925_v17 }
 0x15d   : > { %v2147_v25 = vpop.eup %2146  ;;  %v1219_v27 = vadd.f32 %v2864_v16, %v1133_v15 }
 0x15e   : > { %v2916_v28 = vpop.f32.mrb[28].mxu1  ;;  %v1353_v30 = vadd.f32 %v2147_v25, %v2145_v18  ;;  %2156 = vpow2.f32 %v1279_v22  ;;  %v1261_v31 = vsub.f32 %v1217_v8, %v2912_v23  ;;  %v1309_v33 = vsub.f32 %v1218_v12, %v2912_v23  ;;  %v929_v26 = vpop.f32.mrb[28].mxu0 }
 0x15f   : > { %v2920_v34 = vpop.f32.mrb[29].mxu1  ;;  %2158 = vpow2.f32 %v1327_v21  ;;  %v1220_v36 = vadd.f32 %v2866_v19, %v1135_v24  ;;  %v1139_v37 = vadd.f32 %v2875_v35, %v929_v26  ;;  %v931_v29 = vpop.f32.mrb[29].mxu0 }
 0x160   : > { %v2149_v38 = vpop.eup %2148  ;;  %2160 = vlog2.f32 %v1353_v30  ;;  %v1281_v39 = vmul.f32 1.442695, %v1261_v31  ;;  %v1329_v41 = vmul.f32 1.442695, %v1309_v33  ;;  %v1141_v42 = vadd.f32 %v2880_v40, %v931_v29 }
 0x161   : > { %v2151_v43 = vpop.eup %2150  ;;  %v2925_v44 = vmax.f32 %v1219_v27, %v1220_v36  ;;  %v1221_v46 = vadd.f32 %v2864_v16, %v1139_v37 }
 0x162   : > { %v2928_v47 = vpop.f32.mrb[30].mxu1  ;;  %v1354_v49 = vadd.f32 %v2151_v43, %v2149_v38  ;;  %2162 = vpow2.f32 %v1281_v39  ;;  %v1222_v35 = vadd.f32 %v2866_v19, %v1141_v42  ;;  %v935_v50 = vpop.f32.mrb[30].mxu0 }
 0x163   : > { %v2931_v51 = vpop.f32.mrb[31].mxu1  ;;  %2164 = vpow2.f32 %v1329_v41  ;;  %v1262_v52 = vsub.f32 %v1219_v27, %v2925_v44  ;;  %v1310_v40 = vsub.f32 %v1220_v36, %v2925_v44  ;;  %v1145_v53 = vadd.f32 %v2885_v48, %v935_v50  ;;  %v937_v54 = vpop.f32.mrb[31].mxu0 }
 0x164   : > { %v2153_v55 = vpop.eup %2152  ;;  %2166 = vlog2.f32 %v1354_v49  ;;  %v2937_v56 = vmax.f32 %v1221_v46, %v1222_v35  ;;  %v1147_v58 = vadd.f32 %v2890_v20, %v937_v54 }
 0x165   : > { %v2155_v59 = vpop.eup %2154  ;;  %v1283_v61 = vmul.f32 1.442695, %v1262_v52  ;;  %v1331_v62 = vmul.f32 1.442695, %v1310_v40  ;;  %v2945_v63 = vadd.f32 %v2864_v16, %v1145_v53 }
 0x166   : > { %v1174_v48 = vpop.f32.mrb[0].mxu1  ;;  %v1355_v0 = vadd.f32 %v2155_v59, %v2153_v55  ;;  %v1263_v2 = vsub.f32 %v1221_v46, %v2937_v56  ;;  %v1311_v20 = vsub.f32 %v1222_v35, %v2937_v56  ;;  %v2953_v3 = vadd.f32 %v2866_v19, %v1147_v58  ;;  %v941_v4 = vpop.f32.mrb[32].mxu0 }
 0x167   : > { %v1176_v5 = vpop.f32.mrb[1].mxu1  ;;  %2168 = vpow2.f32 %v1283_v61  ;;  %v1151_v7 = vadd.f32 %v2895_v60, %v941_v4  ;;  %v2964_v8 = vadd.f32 %v2864_v16, %v1174_v48  ;;  %v943_v10 = vpop.f32.mrb[33].mxu0 }
 0x168   : > { %v2967_v11 = vadd.f32 %v2866_v19, %v1176_v5  ;;  %v2157_v12 = vpop.eup %2156  ;;  %2170 = vlog2.f32 %v1355_v0  ;;  %v1285_v13 = vmul.f32 1.442695, %v1263_v2  ;;  %v1333_v15 = vmul.f32 1.442695, %v1311_v20 }
 0x169   : > { %v2971_v17 = vmax.f32 %v2945_v63, %v2953_v3 }
 0x16a   : > { %2317 = shalt.err (!%p2314_p13)
}
 0x16b   : > { %s2318_s17 = scalar_lea.hbm %s2960_s12, 2048  ;;  %s2322_s27 = scalar_lea.hbm %s3294_s6, 8192 }
 0x16c   : > { %p2319_p0 = scmp.ne.s32.totalorder %s2960_s12, %s2318_s17  ;;  %p2323_p3 = scmp.lt.u32.totalorder %s2960_s12, %s3294_s6 }
 0x16d   : > { %p2324_p4 = scmp.lt.u32.totalorder %s2322_s27, %s2318_s17  ;;  %p2326_p6 = scmp.lt.u32.totalorder %s2318_s17, %s2960_s12 }
 0x16e   : > { %p2320_p1 = pnand %p2319_p0, %p2573_p10 }
 0x16f   : > { %p2325_p5 = por %p2324_p4, %p2323_p3 }
 0x170   : > { %p2321_p2 = pneg %p2320_p1 }
 0x171   : > { %p2327_p7 = por %p2326_p6, %p2325_p5 }
 0x173   : > { %p2328_p8 = pnand %p2327_p7, %p2321_p2 }
 0x175   : > { %2331 = shalt.err (!%p2328_p8)
}
 0x176   : > { %s3300_s11 = smov 128   ;;  %s2451_s30 = smov 256   ;;  %v2159_v60 = vpop.eup %2158  ;;  %2172 = vpow2.f32 %v1331_v62  ;;  %v1225_v18 = vadd.f32 %v2864_v16, %v1151_v7  ;;  %v1153_v22 = vadd.f32 %v2900_v1, %v943_v10  ;;  %v3004_v21 = vmax.f32 %v2964_v8, %v2967_v11  ;;  %v1180_v24 = vpop.f32.mrb[2].mxu1 }
 0x177   : > { %s2452_s0 = smov 8   ;;  %s3310_s14 = scalar_lea.sflag [#allocation6], %s2837_s1  ;;  %v2161_v25 = vpop.eup %2160  ;;  %v1356_v27 = vadd.f32 %v2159_v60, %v2157_v12  ;;  %2174 = vpow2.f32 %v1285_v13  ;;  %v1264_v30 = vsub.f32 %v2945_v63, %v2971_v17  ;;  %v1312_v31 = vsub.f32 %v2953_v3, %v2971_v17  ;;  %v947_v33 = vpop.f32.mrb[34].mxu0 }
 0x178   : > { %2048 = dma.vmem_to_hbm [thread:$0]  (%p2573_p10), %s2948_s20, 2048, %s2960_s12, %s3310_s14, %s3300_s11, %s2451_s30, %s2452_s0   ;;  %v1182_v26 = vpop.f32.mrb[3].mxu1  ;;  %v1370_v36 = vmul.f32 0.6931472, %v2161_v25  ;;  %2176 = vpow2.f32 %v1333_v15  ;;  %v1226_v1 = vadd.f32 %v2866_v19, %v1153_v22  ;;  %v1269_v37 = vsub.f32 %v2964_v8, %v3004_v21  ;;  %v949_v29 = vpop.f32.mrb[35].mxu0 }
 0x179   : > { %v2163_v38 = vpop.eup %2162  ;;  %2178 = vlog2.f32 %v1356_v27  ;;  %v1287_v39 = vmul.f32 1.442695, %v1264_v30  ;;  %v1335_v41 = vmul.f32 1.442695, %v1312_v31  ;;  %v1317_v42 = vsub.f32 %v2967_v11, %v3004_v21  ;;  %v3021_v52 = vpop.f32.mrb[4].mxu1  ;;  %p512_p9 = scmp.lt.s32.totalorder %s2430_s29, 1 }
 0x17a   : > { %v2165_v43 = vpop.eup %2164  ;;  %v3016_v46 = vadd.f32 %v1370_v36, %v2872_v32  ;;  %v3018_v49 = vmax.f32 %v1225_v18, %v1226_v1  ;;  %v1297_v35 = vmul.f32 1.442695, %v1269_v37  ;;  %v1157_v50 = vadd.f32 %v2905_v9, %v947_v33  ;;  %v3023_v55 = vpop.f32.mrb[36].mxu0  ;;  %s3312_s27 = sshll.u32 %s2941_s16, 7  ;;  %s1622_s21 = scalar_lea.sflag [#allocation8], %s2837_s1 }
 0x17b   : > { %v2167_v40 = vpop.eup %2166  ;;  %v1357_v53 = vadd.f32 %v2165_v43, %v2163_v38  ;;  %2180 = vpow2.f32 %v1287_v39  ;;  %v1345_v54 = vmul.f32 1.442695, %v1317_v42  ;;  %v3025_v58 = vpop.f32.mrb[5].mxu1  ;;  %v3029_v32 = vadd.f32 %v2864_v16, %v1180_v24  ;;  %s3336_s29 = smov (!%p512_p9, %s2430_s29), 1  ;;  %s3221_s20 = scalar_lea.hbm %s3295_s7, %s3312_s27 }
 0x17c   : > { %v1905_v59 = vadd.f32 18.420681, %v3016_v46  ;;  %v1372_v61 = vmul.f32 0.6931472, %v2167_v40  ;;  %2182 = vpow2.f32 %v1335_v41  ;;  %v1265_v9 = vsub.f32 %v1225_v18, %v3018_v49  ;;  %v3034_v48 = vpop.f32.mrb[37].mxu0  ;;  %v2169_v0 = vpop.eup %2168  ;;  %s514_s12 = scalar_lea.vmem %s3293_s5, %s3336_s29  ;;  %s3311_s29 = sshll.u32 %s2837_s1, 7 }
 0x17d   : > { %2184 = vlog2.f32 %v1357_v53  ;;  %v1313_v62 = vsub.f32 %v1226_v1, %v3018_v49  ;;  %v1227_v63 = vadd.f32 %v2864_v16, %v1157_v50  ;;  %v1159_v3 = vadd.f32 %v2910_v14, %v949_v29  ;;  %v3040_v4 = vpop.f32.mrb[6].mxu1  ;;  %v2171_v5 = vpop.eup %2170  ;;  %s3146_s18 = scalar_lea.vmem [#allocation7], %s3311_s29  ;;  %s2453_s29 = smov [#allocation7]  }
 0x17e   : > { %v1449_v2 = vand.u32 2147483647, %v1905_v59  ;;  %v3037_v20 = vadd.f32 %v1372_v61, %v2882_v45  ;;  %2186 = vpow2.f32 %v1297_v35  ;;  %v1289_v7 = vmul.f32 1.442695, %v1265_v9  ;;  %v3043_v11 = vpop.f32.mrb[38].mxu0  ;;  %v3045_v12 = vpop.f32.mrb[7].mxu1 }
 0x17f   : > { %v1337_v8 = vmul.f32 1.442695, %v1313_v62  ;;  %2188 = vpow2.f32 %v1345_v54  ;;  %v1236_v10 = vadd.f32 %v2866_v19, %v1182_v26  ;;  %v1228_v60 = vadd.f32 %v2866_v19, %v1159_v3  ;;  %v3049_v18 = vpop.f32.mrb[39].mxu0  ;;  %s1655_s17 = sshll.u32 %s3146_s18, 4  ;;  %s2336_s16 = sshll.u32 %s2453_s29, 4  ;;  %s3223_s17 = int_to_ptr.vmem [resolvable:$true] %s1655_s17  ;;  %s2337_s16 = int_to_ptr.vmem [resolvable:$false] %s2336_s16 }
 0x180   : > { %v2173_v13 = vpop.eup %2172  ;;  %v1465_v15 = vsub.f32 0.0, %v1449_v2  ;;  %v1906_v45 = vadd.f32 18.420681, %v3037_v20  ;;  %v1374_v22 = vmul.f32 0.6931472, %v2171_v5  ;;  %2190 = vpow2.f32 %v1289_v7  ;;  %s2338_s11 = scalar_lea.vmem %s2337_s16, 4096  ;;  %p2339_p1 = scmp.lt.s32.totalorder %s3223_s17, %s2337_s16 }
 0x181   : > { %v2175_v14 = vpop.eup %2174  ;;  %v1358_v24 = vadd.f32 %v2173_v13, %v2169_v0  ;;  %v3052_v25 = vmax.f32 %v3029_v32, %v1236_v10  ;;  %2192 = vpow2.f32 %v1337_v8  ;;  %v3054_v33 = vmax.f32 %v1227_v63, %v1228_v60 }
 0x182   : > { %v2177_v27 = vpop.eup %2176  ;;  %v1481_v30 = vmul.f32 1.442695, %v1465_v15  ;;  %v1450_v31 = vand.u32 2147483647, %v1906_v45  ;;  %v3057_v36 = vadd.f32 %v1374_v22, %v2892_v57  ;;  %v3076_v45 = vadd.f32 %v2864_v16, %v3021_v52 }
 0x183   : > { %v2179_v26 = vpop.eup %2178  ;;  %2194 = vlog2.f32 %v1358_v24  ;;  %v1359_v1 = vadd.f32 %v2177_v27, %v2175_v14  ;;  %v1270_v37 = vsub.f32 %v3029_v32, %v3052_v25  ;;  %v1266_v39 = vsub.f32 %v1227_v63, %v3054_v33 }
 0x184   : > { %2196 = vpow2.f32 %v1481_v30  ;;  %v1466_v29 = vsub.f32 0.0, %v1450_v31  ;;  %v1376_v38 = vmul.f32 0.6931472, %v2179_v26  ;;  %v1907_v42 = vadd.f32 18.420681, %v3057_v36 }
 0x185   : > { %v2181_v41 = vpop.eup %2180  ;;  %2198 = vlog2.f32 %v1359_v1  ;;  %v1314_v43 = vsub.f32 %v1228_v60, %v3054_v33  ;;  %v1291_v40 = vmul.f32 1.442695, %v1266_v39  ;;  %v1318_v32 = vsub.f32 %v1236_v10, %v3052_v25 }
 0x186   : > { %v2183_v35 = vpop.eup %2182  ;;  %v1483_v50 = vmul.f32 1.442695, %v1466_v29  ;;  %v3065_v57 = vadd.f32 %v1376_v38, %v2902_v6  ;;  %v1451_v54 = vand.u32 2147483647, %v1907_v42  ;;  %v1299_v3 = vmul.f32 1.442695, %v1270_v37 }
 0x187   : > { %v2185_v53 = vpop.eup %2184  ;;  %v1360_v59 = vadd.f32 %v2183_v35, %v2181_v41  ;;  %v1339_v61 = vmul.f32 1.442695, %v1314_v43  ;;  %v1163_v6 = vadd.f32 %v2916_v28, %v3023_v55  ;;  %v1347_v15 = vmul.f32 1.442695, %v1318_v32 }
 0x188   : > { %v2187_v9 = vpop.eup %2186  ;;  %2200 = vpow2.f32 %v1483_v50  ;;  %v1908_v62 = vadd.f32 18.420681, %v3065_v57  ;;  %v1378_v63 = vmul.f32 0.6931472, %v2185_v53  ;;  %v1467_v2 = vsub.f32 0.0, %v1451_v54 }
 0x189   : > { %v2189_v0 = vpop.eup %2188  ;;  %2202 = vlog2.f32 %v1360_v59  ;;  %v1229_v28 = vadd.f32 %v2864_v16, %v1163_v6  ;;  %v1165_v24 = vadd.f32 %v2920_v34, %v3034_v48  ;;  %v3084_v27 = vadd.f32 %v2866_v19, %v3025_v58 }
 0x18a   : > { %v1452_v5 = vand.u32 2147483647, %v1908_v62  ;;  %v3072_v7 = vadd.f32 %v1378_v63, %v2912_v23  ;;  %v1365_v8 = vadd.f32 %v2189_v0, %v2187_v9  ;;  %2204 = vpow2.f32 %v1291_v40  ;;  %v2191_v13 = vpop.eup %2190 }
 0x18b   : > { %v1485_v10 = vmul.f32 1.442695, %v1467_v2  ;;  %2206 = vpow2.f32 %v1339_v61  ;;  %v2193_v60 = vpop.eup %2192  ;;  %v1230_v29 = vadd.f32 %v2866_v19, %v1165_v24  ;;  %v3089_v38 = vmax.f32 %v3076_v45, %v3084_v27 }
 0x18c   : > { %v1468_v14 = vsub.f32 0.0, %v1452_v5  ;;  %v1909_v22 = vadd.f32 18.420681, %v3072_v7  ;;  %2208 = vlog2.f32 %v1365_v8  ;;  %v1361_v55 = vadd.f32 %v2193_v60, %v2191_v13 }
 0x18d   : > { %v2195_v23 = vpop.eup %2194  ;;  %2210 = vpow2.f32 %v1485_v10  ;;  %v3095_v39 = vmax.f32 %v1229_v28, %v1230_v29  ;;  %v1271_v41 = vsub.f32 %v3076_v45, %v3089_v38  ;;  %v1319_v42 = vsub.f32 %v3084_v27, %v3089_v38 }
 0x18e   : > { %v2197_v52 = vpop.eup %2196  ;;  %v1487_v30 = vmul.f32 1.442695, %v1468_v14  ;;  %v1453_v31 = vand.u32 2147483647, %v1909_v22  ;;  %v1380_v26 = vmul.f32 0.6931472, %v2195_v23  ;;  %2212 = vlog2.f32 %v1361_v55 }
 0x18f   : > { %v2199_v1 = vpop.eup %2198  ;;  %v1513_v37 = vadd.f32 1.0, %v2197_v52  ;;  %v1267_v54 = vsub.f32 %v1229_v28, %v3095_v39  ;;  %v1315_v59 = vsub.f32 %v1230_v29, %v3095_v39  ;;  %v1417_v13 = vmax.f32 %v3016_v46, -18.420681 }
 0x190   : > { %2214 = vpow2.f32 %v1487_v30  ;;  %v1469_v34 = vsub.f32 0.0, %v1453_v31  ;;  %v3093_v48 = vadd.f32 %v1380_v26, %v2925_v44  ;;  %v1382_v58 = vmul.f32 0.6931472, %v2199_v1 }
 0x191   : > { %2216 = vlog2.f32 %v1513_v37  ;;  %v1293_v63 = vmul.f32 1.442695, %v1267_v54  ;;  %v1341_v0 = vmul.f32 1.442695, %v1315_v59  ;;  %v1418_v28 = vmax.f32 %v3037_v20, -18.420681 }
 0x192   : > { %v2201_v43 = vpop.eup %2200  ;;  %v1489_v35 = vmul.f32 1.442695, %v1469_v34  ;;  %v1910_v50 = vadd.f32 18.420681, %v3093_v48  ;;  %v3103_v40 = vadd.f32 %v1382_v58, %v2937_v56  ;;  %2218 = vpow2.f32 %v1299_v3  ;;  %v3128_v37 = vld [vmem:[%s514_s12] ss:$0 sm:$0xff] }
 0x193   : > { %v2203_v44 = vpop.eup %2202  ;;  %v1514_v53 = vadd.f32 1.0, %v2201_v43  ;;  %2220 = vpow2.f32 %v1347_v15  ;;  %v1169_v27 = vadd.f32 %v2928_v47, %v3043_v11  ;;  %v1301_v26 = vmul.f32 1.442695, %v1271_v41  ;;  %s2332_s12 = scalar_lea.vmem %s3223_s17, 2048 }
 0x194   : > { %v2205_v61 = vpop.eup %2204  ;;  %2222 = vpow2.f32 %v1489_v35  ;;  %v1454_v32 = vand.u32 2147483647, %v1910_v50  ;;  %v1911_v9 = vadd.f32 18.420681, %v3103_v40  ;;  %v1384_v56 = vmul.f32 0.6931472, %v2203_v44  ;;  %p2333_p11 = scmp.ne.s32.totalorder %s3223_s17, %s2332_s12  ;;  %p2340_p2 = scmp.lt.s32.totalorder %s2338_s11, %s2332_s12 }
 0x195   : > { %v2207_v62 = vpop.eup %2206  ;;  %2224 = vlog2.f32 %v1514_v53  ;;  %v1419_v58 = vmax.f32 %v3057_v36, -18.420681  ;;  %v1349_v11 = vmul.f32 1.442695, %v1319_v42  ;;  %v1239_v44 = vadd.f32 %v2864_v16, %v3040_v4 }
 0x196   : > { %v2209_v2 = vpop.eup %2208  ;;  %v1470_v3 = vsub.f32 0.0, %v1454_v32  ;;  %v1455_v6 = vand.u32 2147483647, %v1911_v9  ;;  %v1362_v5 = vadd.f32 %v2207_v62, %v2205_v61  ;;  %v3115_v10 = vadd.f32 %v1384_v56, %v2971_v17  ;;  %p2334_p13 = pnand %p2333_p11, %p2573_p10  ;;  %p2341_p3 = por %p2340_p2, %p2339_p1 }
 0x197   : > { %v2211_v8 = vpop.eup %2210  ;;  %v1394_v15 = vmul.f32 0.6931472, %v2209_v2  ;;  %2226 = vpow2.f32 %v1293_v63  ;;  %v1231_v62 = vadd.f32 %v2864_v16, %v1169_v27  ;;  %v1171_v56 = vadd.f32 %v2931_v51, %v3049_v18 }
 0x198   : > { %v1515_v45 = vadd.f32 1.0, %v2211_v8  ;;  %v1491_v60 = vmul.f32 1.442695, %v1470_v3  ;;  %v1471_v14 = vsub.f32 0.0, %v1455_v6  ;;  %2228 = vlog2.f32 %v1362_v5  ;;  %v2213_v22 = vpop.eup %2212  ;;  %p2335_p0 = pneg %p2334_p13 }
 0x199   : > { %v1912_v23 = vadd.f32 18.420681, %v3115_v10  ;;  %v3124_v46 = vadd.f32 %v1394_v15, %v3004_v21  ;;  %2230 = vpow2.f32 %v1341_v0  ;;  %v1386_v24 = vmul.f32 0.6931472, %v2213_v22 }
 0x19a   : > { %v2215_v17 = vpop.eup %2214  ;;  %2232 = vlog2.f32 %v1515_v45  ;;  %v1493_v55 = vmul.f32 1.442695, %v1471_v14  ;;  %v1240_v4 = vadd.f32 %v2866_v19, %v3045_v12  ;;  %v1232_v16 = vadd.f32 %v2866_v19, %v1171_v56  ;;  %p2342_p4 = pnand %p2341_p3, %p2335_p0 }
 0x19b   : > { %v2217_v52 = vpop.eup %2216  ;;  %v1516_v30 = vadd.f32 1.0, %v2215_v17  ;;  %2234 = vpow2.f32 %v1491_v60  ;;  %v1456_v31 = vand.u32 2147483647, %v1912_v23  ;;  %v3131_v21 = vadd.f32 %v1386_v24, %v3018_v49 }
 0x19c   : > { %v2219_v1 = vpop.eup %2218  ;;  %v1530_v20 = vmul.f32 0.6931472, %v2217_v52  ;;  %2236 = vpow2.f32 %v1493_v55  ;;  %v1917_v29 = vadd.f32 18.420681, %v3124_v46  ;;  %v3150_v51 = vmax.f32 %v1239_v44, %v1240_v4 }
 0x19d   : > { %v2221_v34 = vpop.eup %2220  ;;  %2238 = vlog2.f32 %v1516_v30  ;;  %v1472_v47 = vsub.f32 0.0, %v1456_v31  ;;  %v1913_v41 = vadd.f32 18.420681, %v3131_v21  ;;  %v3156_v14 = vmax.f32 %v1231_v62, %v1232_v16 }
 0x19e   : > { %v2223_v43 = vpop.eup %2222  ;;  %v1561_v35 = vadd.f32 %v1530_v20, %v1417_v13  ;;  %v1461_v50 = vand.u32 2147483647, %v1917_v29  ;;  %v1366_v59 = vadd.f32 %v2221_v34, %v2219_v1  ;;  %2240 = vpow2.f32 %v1301_v26 }
 0x19f   : > { %v2225_v53 = vpop.eup %2224  ;;  %v1517_v49 = vadd.f32 1.0, %v2223_v43  ;;  %v1495_v54 = vmul.f32 1.442695, %v1472_v47  ;;  %v1457_v32 = vand.u32 2147483647, %v1913_v41  ;;  %v1272_v19 = vsub.f32 %v1239_v44, %v3150_v51 }
 0x1a0   : > { %v1584_v61 = vadd.f32 %v3128_v37, %v1561_v35  ;;  %v1532_v36 = vmul.f32 0.6931472, %v2225_v53  ;;  %v1477_v9 = vsub.f32 0.0, %v1461_v50  ;;  %v1320_v23 = vsub.f32 %v1240_v4, %v3150_v51 }
 0x1a1   : > { %v2227_v42 = vpop.eup %2226  ;;  %2242 = vlog2.f32 %v1517_v49  ;;  %v1473_v2 = vsub.f32 0.0, %v1457_v32  ;;  %v1420_v24 = vmax.f32 %v3065_v57, -18.420681  ;;  %v1268_v30 = vsub.f32 %v1231_v62, %v3156_v14 }
 0x1a2   : > { %v2229_v63 = vpop.eup %2228  ;;  %1600 = vst [vmem:[%s3146_s18] sm:$0xff] %v1584_v61  ;;  %v1562_v0 = vadd.f32 %v1532_v36, %v1418_v28  ;;  %2244 = vpow2.f32 %v1495_v54  ;;  %v1505_v3 = vmul.f32 1.442695, %v1477_v9  ;;  %v1316_v31 = vsub.f32 %v1232_v16, %v3156_v14 }
 0x1a3   : > { %v2231_v6 = vpop.eup %2230  ;;  %v1388_v5 = vmul.f32 0.6931472, %v2229_v63  ;;  %2246 = vlog2.f32 %v1366_v59  ;;  %v1497_v8 = vmul.f32 1.442695, %v1473_v2  ;;  %v1303_v29 = vmul.f32 1.442695, %v1272_v19 }
 0x1a4   : > { %v2233_v18 = vpop.eup %2232  ;;  %v1585_v12 = vadd.f32 %v3128_v37, %v1562_v0  ;;  %2248 = vpow2.f32 %v1505_v3  ;;  %v1363_v13 = vadd.f32 %v2231_v6, %v2227_v42  ;;  %v1343_v57 = vmul.f32 1.442695, %v1316_v31 }
 0x1a5   : > { %v2235_v15 = vpop.eup %2234  ;;  %v1534_v45 = vmul.f32 0.6931472, %v2233_v18  ;;  %v3154_v60 = vadd.f32 %v1388_v5, %v3054_v33  ;;  %2250 = vpow2.f32 %v1349_v11  ;;  %v1351_v43 = vmul.f32 1.442695, %v1320_v23 }
 0x1a6   : > { %v2237_v22 = vpop.eup %2236  ;;  %1601 = vst [vmem:[%s3146_s18 + $0x8] sm:$0xff] %v1585_v12  ;;  %v1518_v28 = vadd.f32 1.0, %v2235_v15  ;;  %2252 = vpow2.f32 %v1497_v8  ;;  %v1421_v50 = vmax.f32 %v3072_v7, -18.420681  ;;  %v1422_v3 = vmax.f32 %v3093_v48, -18.420681 }
 0x1a7   : > { %v2239_v17 = vpop.eup %2238  ;;  %v1563_v55 = vadd.f32 %v1534_v45, %v1419_v58  ;;  %v1519_v27 = vadd.f32 1.0, %v2237_v22  ;;  %v1914_v33 = vadd.f32 18.420681, %v3154_v60  ;;  %v1295_v58 = vmul.f32 1.442695, %v1268_v30 }
 0x1a8   : > { %v1536_v52 = vmul.f32 0.6931472, %v2239_v17  ;;  %2254 = vlog2.f32 %v1518_v28  ;;  %v2241_v26 = vpop.eup %2240  ;;  %v1423_v16 = vmax.f32 %v3103_v40, -18.420681  ;;  %v1424_v30 = vmax.f32 %v3115_v10, -18.420681 }
 0x1a9   : > { %v1586_v1 = vadd.f32 %v3128_v37, %v1563_v55  ;;  %2256 = vlog2.f32 %v1519_v27  ;;  %v1458_v20 = vand.u32 2147483647, %v1914_v33 }
 0x1aa   : > { %v1564_v34 = vadd.f32 %v1536_v52, %v1420_v24  ;;  %2258 = vlog2.f32 %v1363_v13 }
 0x1ab   : > { %v2243_v47 = vpop.eup %2242  ;;  %1602 = vst [vmem:[%s3146_s18 + $0x10] sm:$0xff] %v1586_v1  ;;  %v1474_v11 = vsub.f32 0.0, %v1458_v20  ;;  %2260 = vpow2.f32 %v1303_v29 }
 0x1ac   : > { %v2245_v35 = vpop.eup %2244  ;;  %v1587_v41 = vadd.f32 %v3128_v37, %v1564_v34  ;;  %v1538_v44 = vmul.f32 0.6931472, %v2243_v47  ;;  %2262 = vpow2.f32 %v1295_v58  ;;  %v1429_v34 = vmax.f32 %v3124_v46, -18.420681 }
 0x1ad   : > { %v2247_v53 = vpop.eup %2246  ;;  %v1520_v49 = vadd.f32 1.0, %v2245_v35  ;;  %v1499_v54 = vmul.f32 1.442695, %v1474_v11  ;;  %2264 = vpow2.f32 %v1343_v57 }
 0x1ae   : > { %v2249_v59 = vpop.eup %2248  ;;  %1603 = vst [vmem:[%s3146_s18 + $0x18] sm:$0xff] %v1587_v41  ;;  %v1565_v61 = vadd.f32 %v1538_v44, %v1421_v50  ;;  %v1396_v36 = vmul.f32 0.6931472, %v2247_v53  ;;  %2266 = vpow2.f32 %v1351_v43  ;;  %v1425_v43 = vmax.f32 %v3131_v21, -18.420681 }
 0x1af   : > { %v2251_v32 = vpop.eup %2250  ;;  %2268 = vlog2.f32 %v1520_v49  ;;  %v1525_v9 = vadd.f32 1.0, %v2249_v59 }
 0x1b0   : > { %v2253_v42 = vpop.eup %2252  ;;  %v1588_v62 = vadd.f32 %v3128_v37, %v1565_v61  ;;  %2270 = vpow2.f32 %v1499_v54  ;;  %v3172_v7 = vadd.f32 %v1396_v36, %v3052_v25  ;;  %v1367_v56 = vadd.f32 %v2251_v32, %v2241_v26 }
 0x1b1   : > { %v1521_v4 = vadd.f32 1.0, %v2253_v42  ;;  %2272 = vlog2.f32 %v1525_v9 }
 0x1b2   : > { %v2255_v63 = vpop.eup %2254  ;;  %1604 = vst [vmem:[%s3146_s18 + $0x20] sm:$0xff] %v1588_v62  ;;  %v1918_v0 = vadd.f32 18.420681, %v3172_v7  ;;  %2274 = vlog2.f32 %v1367_v56 }
 0x1b3   : > { %v2257_v2 = vpop.eup %2256  ;;  %v1540_v6 = vmul.f32 0.6931472, %v2255_v63  ;;  %2276 = vlog2.f32 %v1521_v4  ;;  %v1426_v4 = vmax.f32 %v3154_v60, -18.420681 }
 0x1b4   : > { %v2259_v5 = vpop.eup %2258  ;;  %v1542_v18 = vmul.f32 0.6931472, %v2257_v2  ;;  %v1462_v25 = vand.u32 2147483647, %v1918_v0 }
 0x1b5   : > { %v2261_v12 = vpop.eup %2260  ;;  %v1566_v8 = vadd.f32 %v1540_v6, %v1422_v3  ;;  %v1390_v13 = vmul.f32 0.6931472, %v2259_v5 }
 0x1b6   : > { %v2263_v15 = vpop.eup %2262  ;;  %v1567_v45 = vadd.f32 %v1542_v18, %v1423_v16  ;;  %v1478_v22 = vsub.f32 0.0, %v1462_v25 }
 0x1b7   : > { %v2265_v28 = vpop.eup %2264  ;;  %v1589_v19 = vadd.f32 %v3128_v37, %v1566_v8  ;;  %v3180_v48 = vadd.f32 %v1390_v13, %v3095_v39 }
 0x1b8   : > { %v2267_v23 = vpop.eup %2266  ;;  %v1590_v17 = vadd.f32 %v3128_v37, %v1567_v45  ;;  %v1507_v40 = vmul.f32 1.442695, %v1478_v22  ;;  %v1364_v55 = vadd.f32 %v2265_v28, %v2263_v15  ;;  %v1430_v22 = vmax.f32 %v3172_v7, -18.420681 }
 0x1b9   : > { %v2269_v24 = vpop.eup %2268  ;;  %1605 = vst [vmem:[%s3146_s18 + $0x28] sm:$0xff] %v1589_v19  ;;  %v1915_v27 = vadd.f32 18.420681, %v3180_v48  ;;  %v1368_v33 = vadd.f32 %v2267_v23, %v2261_v12 }
 0x1ba   : > { %v2271_v52 = vpop.eup %2270  ;;  %1606 = vst [vmem:[%s3146_s18 + $0x30] sm:$0xff] %v1590_v17  ;;  %v1544_v31 = vmul.f32 0.6931472, %v2269_v24  ;;  %2278 = vpow2.f32 %v1507_v40 }
 0x1bb   : > { %v2273_v26 = vpop.eup %2272  ;;  %v1522_v1 = vadd.f32 1.0, %v2271_v52  ;;  %v1459_v39 = vand.u32 2147483647, %v1915_v27  ;;  %2280 = vlog2.f32 %v1364_v55  ;;  %v1427_v55 = vmax.f32 %v3180_v48, -18.420681 }
 0x1bc   : > { %v2275_v20 = vpop.eup %2274  ;;  %v1568_v29 = vadd.f32 %v1544_v31, %v1424_v30  ;;  %v1554_v58 = vmul.f32 0.6931472, %v2273_v26  ;;  %2282 = vlog2.f32 %v1368_v33 }
 0x1bd   : > { %v2277_v57 = vpop.eup %2276  ;;  %2284 = vlog2.f32 %v1522_v1  ;;  %v1475_v47 = vsub.f32 0.0, %v1459_v39  ;;  %v1398_v11 = vmul.f32 0.6931472, %v2275_v20 }
 0x1be   : > { %v1591_v10 = vadd.f32 %v3128_v37, %v1568_v29  ;;  %v1546_v35 = vmul.f32 0.6931472, %v2277_v57  ;;  %v1573_v41 = vadd.f32 %v1554_v58, %v1429_v34 }
 0x1bf   : > { %v1501_v50 = vmul.f32 1.442695, %v1475_v47  ;;  %v3191_v44 = vadd.f32 %v1398_v11, %v3089_v38 }
 0x1c0   : > { %1607 = vst [vmem:[%s3146_s18 + $0x38] sm:$0xff] %v1591_v10  ;;  %v1569_v46 = vadd.f32 %v1546_v35, %v1425_v43  ;;  %v1596_v53 = vadd.f32 %v3128_v37, %v1573_v41 }
 0x1c1   : > { %2286 = vpow2.f32 %v1501_v50  ;;  %v1919_v49 = vadd.f32 18.420681, %v3191_v44  ;;  %v1431_v1 = vmax.f32 %v3191_v44, -18.420681 }
 0x1c2   : > { %v1592_v54 = vadd.f32 %v3128_v37, %v1569_v46  ;;  %1612 = vst [vmem:[%s3146_s18 + $0x60] sm:$0xff] %v1596_v53 }
 0x1c3   : > { %v1463_v59 = vand.u32 2147483647, %v1919_v49 }
 0x1c4   : > { %v2279_v61 = vpop.eup %2278  ;;  %1608 = vst [vmem:[%s3146_s18 + $0x40] sm:$0xff] %v1592_v54 }
 0x1c5   : > { %v2281_v21 = vpop.eup %2280  ;;  %v1526_v36 = vadd.f32 1.0, %v2279_v61  ;;  %v1479_v32 = vsub.f32 0.0, %v1463_v59 }
 0x1c6   : > { %v2283_v9 = vpop.eup %2282  ;;  %v1392_v42 = vmul.f32 0.6931472, %v2281_v21 }
 0x1c7   : > { %v2285_v38 = vpop.eup %2284  ;;  %2288 = vlog2.f32 %v1526_v36  ;;  %v1509_v62 = vmul.f32 1.442695, %v1479_v32  ;;  %v1400_v56 = vmul.f32 0.6931472, %v2283_v9 }
 0x1c8   : > { %v1548_v63 = vmul.f32 0.6931472, %v2285_v38  ;;  %v1412_v0 = vadd.f32 %v1392_v42, %v3156_v14 }
 0x1c9   : > { %2290 = vpow2.f32 %v1509_v62  ;;  %v1416_v2 = vadd.f32 %v1400_v56, %v3150_v51 }
 0x1ca   : > { %v1570_v3 = vadd.f32 %v1548_v63, %v1426_v4  ;;  %v1916_v6 = vadd.f32 18.420681, %v1412_v0  ;;  %v1428_v58 = vmax.f32 %v1412_v0, -18.420681 }
 0x1cb   : > { %v2287_v5 = vpop.eup %2286  ;;  %v1920_v16 = vadd.f32 18.420681, %v1416_v2  ;;  %v1432_v47 = vmax.f32 %v1416_v2, -18.420681 }
 0x1cc   : > { %v1593_v18 = vadd.f32 %v3128_v37, %v1570_v3  ;;  %v1523_v25 = vadd.f32 1.0, %v2287_v5  ;;  %v1460_v12 = vand.u32 2147483647, %v1916_v6 }
 0x1cd   : > { %v1464_v8 = vand.u32 2147483647, %v1920_v16 }
 0x1ce   : > { %1609 = vst [vmem:[%s3146_s18 + $0x48] sm:$0xff] %v1593_v18  ;;  %2292 = vlog2.f32 %v1523_v25  ;;  %v1476_v13 = vsub.f32 0.0, %v1460_v12 }
 0x1cf   : > { %v1480_v60 = vsub.f32 0.0, %v1464_v8 }
 0x1d0   : > { %v1503_v15 = vmul.f32 1.442695, %v1476_v13 }
 0x1d1   : > { %v2289_v45 = vpop.eup %2288  ;;  %v1511_v14 = vmul.f32 1.442695, %v1480_v60 }
 0x1d2   : > { %v1556_v51 = vmul.f32 0.6931472, %v2289_v45  ;;  %2294 = vpow2.f32 %v1503_v15 }
 0x1d3   : > { %v2291_v28 = vpop.eup %2290  ;;  %2296 = vpow2.f32 %v1511_v14 }
 0x1d4   : > { %v1574_v19 = vadd.f32 %v1556_v51, %v1430_v22  ;;  %v1527_v23 = vadd.f32 1.0, %v2291_v28 }
 0x1d6   : > { %v1597_v17 = vadd.f32 %v3128_v37, %v1574_v19  ;;  %2298 = vlog2.f32 %v1527_v23 }
 0x1d8   : > { %v2293_v40 = vpop.eup %2292  ;;  %1613 = vst [vmem:[%s3146_s18 + $0x68] sm:$0xff] %v1597_v17 }
 0x1d9   : > { %v1550_v24 = vmul.f32 0.6931472, %v2293_v40 }
 0x1db   : > { %v1571_v27 = vadd.f32 %v1550_v24, %v1427_v55 }
 0x1dc   : > { %v2295_v33 = vpop.eup %2294 }
 0x1dd   : > { %v2297_v52 = vpop.eup %2296  ;;  %v1594_v7 = vadd.f32 %v3128_v37, %v1571_v27  ;;  %v1524_v30 = vadd.f32 1.0, %v2295_v33 }
 0x1de   : > { %v1528_v31 = vadd.f32 1.0, %v2297_v52 }
 0x1df   : > { %1610 = vst [vmem:[%s3146_s18 + $0x50] sm:$0xff] %v1594_v7  ;;  %2300 = vlog2.f32 %v1524_v30 }
 0x1e0   : > { %v2299_v26 = vpop.eup %2298  ;;  %2302 = vlog2.f32 %v1528_v31 }
 0x1e1   : > { %v1558_v39 = vmul.f32 0.6931472, %v2299_v26 }
 0x1e3   : > { %v1575_v20 = vadd.f32 %v1558_v39, %v1431_v1 }
 0x1e5   : > { %v1598_v48 = vadd.f32 %v3128_v37, %v1575_v20 }
 0x1e7   : > { %1614 = vst [vmem:[%s3146_s18 + $0x70] sm:$0xff] %v1598_v48 }
 0x1e9   : > { %v2301_v29 = vpop.eup %2300 }
 0x1ea   : > { %v2303_v34 = vpop.eup %2302  ;;  %v1552_v57 = vmul.f32 0.6931472, %v2301_v29 }
 0x1eb   : > { %v1560_v11 = vmul.f32 0.6931472, %v2303_v34 }
 0x1ec   : > { %v1572_v10 = vadd.f32 %v1552_v57, %v1428_v58 }
 0x1ed   : > { %v1576_v43 = vadd.f32 %v1560_v11, %v1432_v47 }
 0x1ee   : > { %v1595_v35 = vadd.f32 %v3128_v37, %v1572_v10 }
 0x1ef   : > { %v1599_v41 = vadd.f32 %v3128_v37, %v1576_v43 }
 0x1f0   : > { %1611 = vst [vmem:[%s3146_s18 + $0x58] sm:$0xff] %v1595_v35 }
 0x1f1   : > { %1615 = vst [vmem:[%s3146_s18 + $0x78] sm:$0xff] %v1599_v41 }
 0x1f2   : > { %2345 = shalt.err (!%p2342_p4)
}
 0x1f3   : > { %s2346_s18 = scalar_lea.hbm %s3221_s20, 2048  ;;  %s2350_s14 = scalar_lea.hbm %s3295_s7, 8192 }
 0x1f4   : > { %p2347_p5 = scmp.ne.s32.totalorder %s3221_s20, %s2346_s18  ;;  %p2351_p8 = scmp.lt.u32.totalorder %s3221_s20, %s3295_s7 }
 0x1f5   : > { %p2352_p9 = scmp.lt.u32.totalorder %s2350_s14, %s2346_s18  ;;  %p2354_p13 = scmp.lt.u32.totalorder %s2346_s18, %s3221_s20 }
 0x1f6   : > { %p2348_p6 = pnand %p2347_p5, %p2573_p10 }
 0x1f7   : > { %p2353_p11 = por %p2352_p9, %p2351_p8 }
 0x1f8   : > { %p2349_p7 = pneg %p2348_p6 }
 0x1f9   : > { %p2355_p0 = por %p2354_p13, %p2353_p11 }
 0x1fb   : > { %p2356_p1 = pnand %p2355_p0, %p2349_p7 }
 0x1fd   : > { %2359 = shalt.err (!%p2356_p1)
}
 0x1fe   : > { %s3313_s11 = smov 128  }
 0x1ff   : > { %2049 = dma.vmem_to_hbm [thread:$0]  (%p2573_p10), %s3223_s17, 2048, %s3221_s20, %s1622_s21, %s3313_s11, %s2451_s30, %s2452_s0  }
 0x200 PF: > { %p2059_p2 = scmp.ge.s32.totalorder %s2446_s10, 2  ;;  %s1670_s12 = sand.u32 1, %s2410_s24  }
 0x201   : > { %s1671_s18 = scalar_lea.sflag [#allocation6], %s1670_s12 }
 0x202   : > { %p2053_p3 = pnand %p2059_p2, %p2580_p12 }
 0x204   : > { %2401 = dma.done.wait (!%p2053_p3), %s1671_s18, 2048  }
 0x205   : > { %2403 = vsyncadd (!%p2053_p3), %s1671_s18, 4294965248  ;;  %s1680_s22 = scalar_lea.sflag [#allocation8], %s1670_s12 }
 0x206   : > { %2405 = dma.done.wait (!%p2053_p3), %s1680_s22, 2048  }
 0x207   : > { %2407 = vsyncadd (!%p2053_p3), %s1680_s22, 4294965248  ;;  %s24_s10 = sadd.s32 1, %s2446_s10   ;;  %s3314_s0 = sld [smem:[#allocation11_spill]] }
 0x208   : > { %p21_p4 = scmp.ge.s32.totalorder %s24_s10, 6   ;;  %s3315_s1 = sld [smem:[#allocation12_spill]] }
 0x209   : > { %s3316_s24 = smov %s2414_s25  ;;  %s3317_s25 = smov %s2418_s26 }
 0x20a   : > { %s3318_s26 = smov %s2578_s23  ;;  %s3319_s27 = smov %s2426_s28 }
 0x20b   : > { %s3320_s28 = smov %s2567_s19  ;;  %s3321_s29 = smov %s2438_s8 }
 0x20c   : > { %s3322_s30 = smov %s2442_s9  ;;  %23 = sbr.rel (!%p21_p4) target bundleno = 11 (0xb), region = 210 }
 0x20d   : > { %s3323_s8 = smov %s3314_s0 }
 0x20e   : > { %s3324_s9 = smov %s3315_s1 }
 0x213   :  { %1685 = vsyncpa [#allocation6], 1 }
 0x214   :  { %1687 = vsyncpa [#allocation6 + $0x1], 1 }
 0x215   :  { %1688 = vsyncpa [#allocation8], 1 }
 0x216   :  { %1690 = vsyncpa [#allocation8 + $0x1], 1 }

</bundles_post_ra>
